<compile_context>
chip_gen: v6e
topology: v6e:2x2x1
jax: 0.10.0
libtpu: 0.0.40
codegen_flags: <defaults>
</compile_context>

<pallas_src>
import jax
import jax.numpy as jnp
from jax.experimental import pallas as pl
from jax.experimental.pallas import tpu as pltpu


# ---------------------------------------------------------------------------
# Fused forward kernel: abs-diff-mean + conv3x3(ReLU) + conv3x3, one invocation
# ---------------------------------------------------------------------------
def _make_fused_kernel(B, H, W, hidden):
    """Builds the fused kernel for images of (B, 1, H, W)."""
    N = B * H * W           # flattened pixel count (lane dimension)

    taps_meta = []
    for tap in range(9):
        ky, kx = divmod(tap, 3)
        dy, dx = ky - 1, kx - 1
        taps_meta.append((tap, dy, dx, dy * W + dx))

    def kernel(x8_ref, masks_ref, w1t_ref, b1_ref, w2t_ref, b2_ref,
               pred_ref, mse_ref):
        # ---- mean(|src - tgt|): "MSE pre" (== "MSE post": identity warp since
        #      src_agg_field is None).  f32 reduction; scalar goes to SMEM.
        src = x8_ref[0:1, :]                   # (1, N) f32
        tgt = x8_ref[1:2, :]                   # (1, N) f32
        mse_ref[0, 0] = jnp.sum(jnp.abs(src - tgt)) * (1.0 / N)

        # Tap-validity masks were hoisted to the wrapper (depend only on
        # B, H, W) and arrive as a (16, N) f32 input; build bools once and
        # reuse them for both conv layers.
        tap_valid = [masks_ref[t:t + 1, :] != 0.0 for t in range(9)]  # (1,N) bool

        def im2col_bf16(x):
            # x: (C, N) f32 with C a multiple of 8.  Returns (9*C, N) bf16.
            #
            # INVARIANT: the flat-N halo reads (lane rotations by dy*W + dx)
            # wrap around the image / into the neighbouring batch image; the
            # tap masks zero *exactly* those positions.  Only valid for a
            # stride-1, dilation-1, 3x3 conv on identity-warped NCHW-flat data.
            C = x.shape[0]
            cast_early = (C % 16 == 0)     # bf16 sublane tile is 16 rows
            taps = []
            for tap, dy, dx, off in taps_meta:
                if dy == 0 and dx == 0:
                    t = x                  # centre tap: no shift, all valid
                else:
                    rolled = pltpu.roll(x, shift=(-off) % N, axis=1)
                    t = jnp.where(tap_valid[tap], rolled, 0.0)
                taps.append(t.astype(jnp.bfloat16) if cast_early else t)
            p = jnp.concatenate(taps, axis=0)
            return p if cast_early else p.astype(jnp.bfloat16)

        # ---- layer 1: conv3x3(cat(warped_src, tgt)) + bias, ReLU ------------
        p1 = im2col_bf16(x8_ref[...])                      # (9*8, N) bf16
        h = jnp.dot(w1t_ref[...], p1,
                    preferred_element_type=jnp.float32)    # (hidden, N) f32
        h = jnp.maximum(h + b1_ref[...], 0.0)

        # ---- layer 2 (hidden activation never leaves VMEM/vregs) ------------
        p2 = im2col_bf16(h)                                # (9*hidden, N) bf16
        out = jnp.dot(w2t_ref[...], p2,
                      preferred_element_type=jnp.float32)  # (2, N) f32

        # ---- single unmasked lane-dense store: pred_ref is (2, B*H*W) -------
        pred_ref[...] = out + b2_ref[...]

    return kernel


def _fused_forward_call(x8, masks, w1t, b1, w2t, b2, *, B, H, W, hidden):
    N = B * H * W
    assert N % 128 == 0, "flattened pixel count must be lane-tile aligned"
    kernel = _make_fused_kernel(B, H, W, hidden)
    vmem = pltpu.MemorySpace.VMEM
    smem = pltpu.MemorySpace.SMEM
    return pl.pallas_call(
        kernel,
        out_shape=(jax.ShapeDtypeStruct((2, N), jnp.float32),   # (C, B*HW) lane-dense
                   jax.ShapeDtypeStruct((1, 1), jnp.float32)),  # mse scalar
        in_specs=[pl.BlockSpec(memory_space=vmem)] * 6,
        out_specs=(pl.BlockSpec(memory_space=vmem),
                   pl.BlockSpec(memory_space=smem)),
    )(x8, masks, w1t, b1, w2t, b2)


# ---------------------------------------------------------------------------
# Parameters (deterministic stand-in for the checkpoint-loaded aligner net)
# ---------------------------------------------------------------------------
def init_params(hidden=32, seed=42):
    k1, k2 = jax.random.split(jax.random.PRNGKey(seed))
    w1 = 0.1 * jax.random.normal(k1, (3, 3, 2, hidden), jnp.float32)   # HWIO
    b1 = jnp.zeros((hidden,), jnp.float32)
    w2 = 0.1 * jax.random.normal(k2, (3, 3, hidden, 2), jnp.float32)   # HWIO
    b2 = jnp.zeros((2,), jnp.float32)
    return {"w1": w1, "b1": b1, "w2": w2, "b2": b2}


def pack_params_for_kernel(params):
    """One-time repack into the kernel's bf16 (Cout, 9*Cin) / f32 (Cout,1) layouts."""
    w1, w2 = params["w1"], params["w2"]
    hidden = w1.shape[-1]
    cin = w1.shape[2]
    cin_pad = 8
    # Zero-pad layer-1 input channels 2 -> 8 so every im2col tap block is a
    # full f32 sublane tile (no cross-sublane relayouts in the concat); the
    # extra K columns are zero so the matmul result is unchanged.
    w1p = jnp.zeros((3, 3, cin_pad, hidden), jnp.float32).at[:, :, :cin, :].set(w1)
    w1t = w1p.reshape(9 * cin_pad, hidden).T            # (hidden, 9*8)
    w2t = w2.reshape(9 * hidden, 2).T                   # (2, 9*hidden)
    return {
        "w1t": jnp.asarray(w1t, jnp.bfloat16),          # bf16 MXU operands,
        "w2t": jnp.asarray(w2t, jnp.bfloat16),          # f32 accumulation in-kernel
        "b1": params["b1"].reshape(hidden, 1).astype(jnp.float32),
        "b2": params["b2"].reshape(2, 1).astype(jnp.float32),
    }


def _make_tap_masks(B, H, W):
    """(16, N) f32: rows 0..8 are the 3x3 tap validity masks, rest zero pad."""
    N = B * H * W
    lane = jnp.arange(N, dtype=jnp.int32)
    x_idx = lane % W
    y_idx = (lane // W) % H
    rows = []
    for tap in range(9):
        ky, kx = divmod(tap, 3)
        dy, dx = ky - 1, kx - 1
        valid = ((y_idx + dy >= 0) & (y_idx + dy < H) &
                 (x_idx + dx >= 0) & (x_idx + dx < W))
        rows.append(valid.astype(jnp.float32))
    masks = jnp.stack(rows, axis=0)                                   # (9, N)
    return jnp.concatenate([masks, jnp.zeros((7, N), jnp.float32)], axis=0)


# ---------------------------------------------------------------------------
# Model forward (mirrors Model.forward with src_agg_field / folds = None)
# ---------------------------------------------------------------------------
@jax.jit
def model_forward(src_img, tgt_img, kparams):
    B, C, H, W = src_img.shape
    if C != 1:
        raise ValueError("Model expects single-channel images.")
    N = B * H * W
    hidden = kparams["w1t"].shape[0]

    # Free (bitcast-level) reshapes: row-major NCHW flattening matches the
    # kernel lane order n = b*H*W + y*W + x.  The two channels of
    # net_input = cat(warped_src, tgt) plus 6 zero rows form one 8-sublane tile.
    src2 = src_img.reshape(1, N).astype(jnp.float32)
    tgt2 = tgt_img.reshape(1, N).astype(jnp.float32)
    x8 = jnp.concatenate([src2, tgt2, jnp.zeros((6, N), jnp.float32)], axis=0)
    masks = _make_tap_masks(B, H, W)     # static-shape constants (folded by XLA)

    pred_flat, mse = _fused_forward_call(
        x8, masks, kparams["w1t"], kparams["b1"], kparams["w2t"], kparams["b2"],
        B=B, H=H, W=W, hidden=hidden)

    # (2, B*HW) lane-dense kernel output -> NCHW; the tiny B/C interleave is
    # done here so the kernel keeps one unmasked 512-lane store.
    pred_res = pred_flat.reshape(2, B, H, W).transpose(1, 0, 2, 3)
    mse_pre = mse[0, 0]
    # src_agg_field is None -> warped_src_img == src_img, so "MSE post" is the
    # same value; reuse instead of recomputing.
    mse_post = mse_pre

    # TODO(synk): bilinear field warping ("MSE final" / from_pixels warp) and
    # the overfit_opt gradient fine-tuning loop have no clean single-kernel
    # Pallas equivalent and are omitted; pred_res is returned directly.
    return pred_res, mse_pre, mse_post


# ---------------------------------------------------------------------------
# Pure-JAX reference (same bf16-operand / f32-accum math, for correctness only)
# ---------------------------------------------------------------------------
def _reference_forward(src_img, tgt_img, params):
    mse = jnp.mean(jnp.abs(src_img - tgt_img))
    net_in = jnp.concatenate([src_img, tgt_img], axis=1)
    dn = ("NCHW", "HWIO", "NCHW")
    h = jax.lax.conv_general_dilated(
        net_in.astype(jnp.bfloat16), params["w1"].astype(jnp.bfloat16),
        (1, 1), "SAME", dimension_numbers=dn,
        preferred_element_type=jnp.float32)
    h = jnp.maximum(h + params["b1"][None, :, None, None], 0.0)
    out = jax.lax.conv_general_dilated(
        h.astype(jnp.bfloat16), params["w2"].astype(jnp.bfloat16),
        (1, 1), "SAME", dimension_numbers=dn,
        preferred_element_type=jnp.float32)
    return out + params["b2"][None, :, None, None], mse


if __name__ == "__main__":
    key = jax.random.PRNGKey(0)
    k_src, k_tgt = jax.random.split(key)

    B, C, H, W = 2, 1, 16, 16       # grayscale image pair, NCHW
    src_img = jax.random.normal(k_src, (B, C, H, W), jnp.float32)
    tgt_img = jax.random.normal(k_tgt, (B, C, H, W), jnp.float32)

    params = init_params(hidden=32)
    kparams = pack_params_for_kernel(params)

    pred_res, mse_pre, mse_post = model_forward(src_img, tgt_img, kparams)
    jax.block_until_ready((pred_res, mse_pre, mse_post))

    assert pred_res.shape == (B, 2, H, W)
    assert pred_res.dtype == jnp.float32

    # Correctness check against a pure-JAX reference of the same stand-in net.
    ref_pred, ref_mse = _reference_forward(src_img, tgt_img, params)
    max_err = float(jnp.max(jnp.abs(pred_res - ref_pred)))
    assert jnp.allclose(pred_res, ref_pred, atol=5e-3, rtol=5e-3), max_err
    assert abs(float(mse_pre) - float(ref_mse)) < 1e-5
    assert abs(float(mse_post) - float(ref_mse)) < 1e-5

    print("KERNEL_OK")
</pallas_src>

<mosaic_0001>
module attributes {stable_mosaic.version = 11 : i64} {
  func.func @kernel(%arg0: memref<8x512xf32, #tpu.memory_space<vmem>>, %arg1: memref<16x512xf32, #tpu.memory_space<vmem>>, %arg2: memref<32x72xbf16, #tpu.memory_space<vmem>>, %arg3: memref<32x1xf32, #tpu.memory_space<vmem>>, %arg4: memref<2x288xbf16, #tpu.memory_space<vmem>>, %arg5: memref<2x1xf32, #tpu.memory_space<vmem>>, %arg6: memref<2x512xf32, #tpu.memory_space<vmem>>, %arg7: memref<1x1xf32, #tpu.memory_space<smem>>) attributes {dimension_semantics = [], scalar_prefetch = 0 : i64, scratch_operands = 0 : i64, tpu.core_type = #tpu.core_type<tc>} {
    %c0 = arith.constant 0 : index
    %c0_0 = arith.constant 0 : index
    %0 = vector.load %arg0[%c0, %c0_0] : memref<8x512xf32, #tpu.memory_space<vmem>>, vector<1x512xf32>
    %c1 = arith.constant 1 : index
    %c0_1 = arith.constant 0 : index
    %1 = vector.load %arg0[%c1, %c0_1] : memref<8x512xf32, #tpu.memory_space<vmem>>, vector<1x512xf32>
    %2 = arith.subf %0, %1 : vector<1x512xf32>
    %3 = math.absf %2 : vector<1x512xf32>
    %4 = vector.shape_cast %3 : vector<1x512xf32> to vector<1x1x512xf32>
    %cst = arith.constant dense<0.000000e+00> : vector<1xf32>
    %5 = vector.multi_reduction <add>, %4, %cst [1, 2] : vector<1x1x512xf32> to vector<1xf32>
    %6 = vector.shape_cast %5 : vector<1xf32> to vector<1x1x1xf32>
    %7 = vector.extract %6[0, 0, 0] : f32 from vector<1x1x1xf32>
    %cst_2 = arith.constant 0.001953125 : f32
    %8 = arith.mulf %7, %cst_2 : f32
    %c0_3 = arith.constant 0 : index
    %c0_4 = arith.constant 0 : index
    %9 = memref.load %arg7[%c0_3, %c0_4] : memref<1x1xf32, #tpu.memory_space<smem>>
    memref.store %8, %arg7[%c0_3, %c0_4] : memref<1x1xf32, #tpu.memory_space<smem>>
    %c0_5 = arith.constant 0 : index
    %c0_6 = arith.constant 0 : index
    %10 = vector.load %arg1[%c0_5, %c0_6] : memref<16x512xf32, #tpu.memory_space<vmem>>, vector<1x512xf32>
    %cst_7 = arith.constant 0.000000e+00 : f32
    %11 = vector.broadcast %cst_7 : f32 to vector<1x512xf32>
    %12 = arith.cmpf one, %10, %11 : vector<1x512xf32>
    %c1_8 = arith.constant 1 : index
    %c0_9 = arith.constant 0 : index
    %13 = vector.load %arg1[%c1_8, %c0_9] : memref<16x512xf32, #tpu.memory_space<vmem>>, vector<1x512xf32>
    %cst_10 = arith.constant 0.000000e+00 : f32
    %14 = vector.broadcast %cst_10 : f32 to vector<1x512xf32>
    %15 = arith.cmpf one, %13, %14 : vector<1x512xf32>
    %c2 = arith.constant 2 : index
    %c0_11 = arith.constant 0 : index
    %16 = vector.load %arg1[%c2, %c0_11] : memref<16x512xf32, #tpu.memory_space<vmem>>, vector<1x512xf32>
    %cst_12 = arith.constant 0.000000e+00 : f32
    %17 = vector.broadcast %cst_12 : f32 to vector<1x512xf32>
    %18 = arith.cmpf one, %16, %17 : vector<1x512xf32>
    %c3 = arith.constant 3 : index
    %c0_13 = arith.constant 0 : index
    %19 = vector.load %arg1[%c3, %c0_13] : memref<16x512xf32, #tpu.memory_space<vmem>>, vector<1x512xf32>
    %cst_14 = arith.constant 0.000000e+00 : f32
    %20 = vector.broadcast %cst_14 : f32 to vector<1x512xf32>
    %21 = arith.cmpf one, %19, %20 : vector<1x512xf32>
    %c5 = arith.constant 5 : index
    %c0_15 = arith.constant 0 : index
    %22 = vector.load %arg1[%c5, %c0_15] : memref<16x512xf32, #tpu.memory_space<vmem>>, vector<1x512xf32>
    %cst_16 = arith.constant 0.000000e+00 : f32
    %23 = vector.broadcast %cst_16 : f32 to vector<1x512xf32>
    %24 = arith.cmpf one, %22, %23 : vector<1x512xf32>
    %c6 = arith.constant 6 : index
    %c0_17 = arith.constant 0 : index
    %25 = vector.load %arg1[%c6, %c0_17] : memref<16x512xf32, #tpu.memory_space<vmem>>, vector<1x512xf32>
    %cst_18 = arith.constant 0.000000e+00 : f32
    %26 = vector.broadcast %cst_18 : f32 to vector<1x512xf32>
    %27 = arith.cmpf one, %25, %26 : vector<1x512xf32>
    %c7 = arith.constant 7 : index
    %c0_19 = arith.constant 0 : index
    %28 = vector.load %arg1[%c7, %c0_19] : memref<16x512xf32, #tpu.memory_space<vmem>>, vector<1x512xf32>
    %cst_20 = arith.constant 0.000000e+00 : f32
    %29 = vector.broadcast %cst_20 : f32 to vector<1x512xf32>
    %30 = arith.cmpf one, %28, %29 : vector<1x512xf32>
    %c8 = arith.constant 8 : index
    %c0_21 = arith.constant 0 : index
    %31 = vector.load %arg1[%c8, %c0_21] : memref<16x512xf32, #tpu.memory_space<vmem>>, vector<1x512xf32>
    %cst_22 = arith.constant 0.000000e+00 : f32
    %32 = vector.broadcast %cst_22 : f32 to vector<1x512xf32>
    %33 = arith.cmpf one, %31, %32 : vector<1x512xf32>
    %c0_23 = arith.constant 0 : index
    %c0_24 = arith.constant 0 : index
    %34 = vector.load %arg0[%c0_23, %c0_24] : memref<8x512xf32, #tpu.memory_space<vmem>>, vector<8x512xf32>
    %c17_i32 = arith.constant 17 : i32
    %35 = tpu.dynamic_rotate %34 by %c17_i32 dim 1 : vector<8x512xf32>, i32 -> vector<8x512xf32>
    %cst_25 = arith.constant 0.000000e+00 : f32
    %36 = vector.shape_cast %12 : vector<1x512xi1> to vector<1x512xi1>
    %37 = vector.broadcast %36 : vector<1x512xi1> to vector<8x512xi1>
    %38 = vector.broadcast %cst_25 : f32 to vector<8x512xf32>
    %39 = arith.select %37, %35, %38 : vector<8x512xi1>, vector<8x512xf32>
    %c16_i32 = arith.constant 16 : i32
    %40 = tpu.dynamic_rotate %34 by %c16_i32 dim 1 : vector<8x512xf32>, i32 -> vector<8x512xf32>
    %cst_26 = arith.constant 0.000000e+00 : f32
    %41 = vector.shape_cast %15 : vector<1x512xi1> to vector<1x512xi1>
    %42 = vector.broadcast %41 : vector<1x512xi1> to vector<8x512xi1>
    %43 = vector.broadcast %cst_26 : f32 to vector<8x512xf32>
    %44 = arith.select %42, %40, %43 : vector<8x512xi1>, vector<8x512xf32>
    %c15_i32 = arith.constant 15 : i32
    %45 = tpu.dynamic_rotate %34 by %c15_i32 dim 1 : vector<8x512xf32>, i32 -> vector<8x512xf32>
    %cst_27 = arith.constant 0.000000e+00 : f32
    %46 = vector.shape_cast %18 : vector<1x512xi1> to vector<1x512xi1>
    %47 = vector.broadcast %46 : vector<1x512xi1> to vector<8x512xi1>
    %48 = vector.broadcast %cst_27 : f32 to vector<8x512xf32>
    %49 = arith.select %47, %45, %48 : vector<8x512xi1>, vector<8x512xf32>
    %c1_i32 = arith.constant 1 : i32
    %50 = tpu.dynamic_rotate %34 by %c1_i32 dim 1 : vector<8x512xf32>, i32 -> vector<8x512xf32>
    %cst_28 = arith.constant 0.000000e+00 : f32
    %51 = vector.shape_cast %21 : vector<1x512xi1> to vector<1x512xi1>
    %52 = vector.broadcast %51 : vector<1x512xi1> to vector<8x512xi1>
    %53 = vector.broadcast %cst_28 : f32 to vector<8x512xf32>
    %54 = arith.select %52, %50, %53 : vector<8x512xi1>, vector<8x512xf32>
    %c511_i32 = arith.constant 511 : i32
    %55 = tpu.dynamic_rotate %34 by %c511_i32 dim 1 : vector<8x512xf32>, i32 -> vector<8x512xf32>
    %cst_29 = arith.constant 0.000000e+00 : f32
    %56 = vector.shape_cast %24 : vector<1x512xi1> to vector<1x512xi1>
    %57 = vector.broadcast %56 : vector<1x512xi1> to vector<8x512xi1>
    %58 = vector.broadcast %cst_29 : f32 to vector<8x512xf32>
    %59 = arith.select %57, %55, %58 : vector<8x512xi1>, vector<8x512xf32>
    %c497_i32 = arith.constant 497 : i32
    %60 = tpu.dynamic_rotate %34 by %c497_i32 dim 1 : vector<8x512xf32>, i32 -> vector<8x512xf32>
    %cst_30 = arith.constant 0.000000e+00 : f32
    %61 = vector.shape_cast %27 : vector<1x512xi1> to vector<1x512xi1>
    %62 = vector.broadcast %61 : vector<1x512xi1> to vector<8x512xi1>
    %63 = vector.broadcast %cst_30 : f32 to vector<8x512xf32>
    %64 = arith.select %62, %60, %63 : vector<8x512xi1>, vector<8x512xf32>
    %c496_i32 = arith.constant 496 : i32
    %65 = tpu.dynamic_rotate %34 by %c496_i32 dim 1 : vector<8x512xf32>, i32 -> vector<8x512xf32>
    %cst_31 = arith.constant 0.000000e+00 : f32
    %66 = vector.shape_cast %30 : vector<1x512xi1> to vector<1x512xi1>
    %67 = vector.broadcast %66 : vector<1x512xi1> to vector<8x512xi1>
    %68 = vector.broadcast %cst_31 : f32 to vector<8x512xf32>
    %69 = arith.select %67, %65, %68 : vector<8x512xi1>, vector<8x512xf32>
    %c495_i32 = arith.constant 495 : i32
    %70 = tpu.dynamic_rotate %34 by %c495_i32 dim 1 : vector<8x512xf32>, i32 -> vector<8x512xf32>
    %cst_32 = arith.constant 0.000000e+00 : f32
    %71 = vector.shape_cast %33 : vector<1x512xi1> to vector<1x512xi1>
    %72 = vector.broadcast %71 : vector<1x512xi1> to vector<8x512xi1>
    %73 = vector.broadcast %cst_32 : f32 to vector<8x512xf32>
    %74 = arith.select %72, %70, %73 : vector<8x512xi1>, vector<8x512xf32>
    %75 = tpu.concatenate %39, %44, %49, %54, %34, %59, %64, %69, %74 in 0 : vector<8x512xf32>, vector<8x512xf32>, vector<8x512xf32>, vector<8x512xf32>, vector<8x512xf32>, vector<8x512xf32>, vector<8x512xf32>, vector<8x512xf32>, vector<8x512xf32> -> vector<72x512xf32>
    %76 = arith.truncf %75 : vector<72x512xf32> to vector<72x512xbf16>
    %c0_33 = arith.constant 0 : index
    %c0_34 = arith.constant 0 : index
    %77 = vector.load %arg2[%c0_33, %c0_34] : memref<32x72xbf16, #tpu.memory_space<vmem>>, vector<32x72xbf16>
    %cst_35 = arith.constant dense<0.000000e+00> : vector<32x512xf32>
    %78 = tpu.matmul %77, %76, %cst_35 {dimension_numbers = #tpu.dot_dimension_numbers<[1], [0], [0], [1], [0, 0, 1, 1], [], []>} : vector<32x72xbf16>, vector<72x512xbf16>, vector<32x512xf32> -> vector<32x512xf32>
    %c0_36 = arith.constant 0 : index
    %c0_37 = arith.constant 0 : index
    %79 = vector.load %arg3[%c0_36, %c0_37] : memref<32x1xf32, #tpu.memory_space<vmem>>, vector<32x1xf32>
    %80 = vector.broadcast %79 : vector<32x1xf32> to vector<32x512xf32>
    %81 = arith.addf %78, %80 : vector<32x512xf32>
    %cst_38 = arith.constant 0.000000e+00 : f32
    %82 = vector.broadcast %cst_38 : f32 to vector<32x512xf32>
    %83 = arith.maximumf %81, %82 : vector<32x512xf32>
    %c17_i32_39 = arith.constant 17 : i32
    %84 = tpu.dynamic_rotate %83 by %c17_i32_39 dim 1 : vector<32x512xf32>, i32 -> vector<32x512xf32>
    %cst_40 = arith.constant 0.000000e+00 : f32
    %85 = vector.shape_cast %12 : vector<1x512xi1> to vector<1x512xi1>
    %86 = vector.broadcast %85 : vector<1x512xi1> to vector<32x512xi1>
    %87 = vector.broadcast %cst_40 : f32 to vector<32x512xf32>
    %88 = arith.select %86, %84, %87 : vector<32x512xi1>, vector<32x512xf32>
    %89 = arith.truncf %88 : vector<32x512xf32> to vector<32x512xbf16>
    %c16_i32_41 = arith.constant 16 : i32
    %90 = tpu.dynamic_rotate %83 by %c16_i32_41 dim 1 : vector<32x512xf32>, i32 -> vector<32x512xf32>
    %cst_42 = arith.constant 0.000000e+00 : f32
    %91 = vector.shape_cast %15 : vector<1x512xi1> to vector<1x512xi1>
    %92 = vector.broadcast %91 : vector<1x512xi1> to vector<32x512xi1>
    %93 = vector.broadcast %cst_42 : f32 to vector<32x512xf32>
    %94 = arith.select %92, %90, %93 : vector<32x512xi1>, vector<32x512xf32>
    %95 = arith.truncf %94 : vector<32x512xf32> to vector<32x512xbf16>
    %c15_i32_43 = arith.constant 15 : i32
    %96 = tpu.dynamic_rotate %83 by %c15_i32_43 dim 1 : vector<32x512xf32>, i32 -> vector<32x512xf32>
    %cst_44 = arith.constant 0.000000e+00 : f32
    %97 = vector.shape_cast %18 : vector<1x512xi1> to vector<1x512xi1>
    %98 = vector.broadcast %97 : vector<1x512xi1> to vector<32x512xi1>
    %99 = vector.broadcast %cst_44 : f32 to vector<32x512xf32>
    %100 = arith.select %98, %96, %99 : vector<32x512xi1>, vector<32x512xf32>
    %101 = arith.truncf %100 : vector<32x512xf32> to vector<32x512xbf16>
    %c1_i32_45 = arith.constant 1 : i32
    %102 = tpu.dynamic_rotate %83 by %c1_i32_45 dim 1 : vector<32x512xf32>, i32 -> vector<32x512xf32>
    %cst_46 = arith.constant 0.000000e+00 : f32
    %103 = vector.shape_cast %21 : vector<1x512xi1> to vector<1x512xi1>
    %104 = vector.broadcast %103 : vector<1x512xi1> to vector<32x512xi1>
    %105 = vector.broadcast %cst_46 : f32 to vector<32x512xf32>
    %106 = arith.select %104, %102, %105 : vector<32x512xi1>, vector<32x512xf32>
    %107 = arith.truncf %106 : vector<32x512xf32> to vector<32x512xbf16>
    %108 = arith.truncf %83 : vector<32x512xf32> to vector<32x512xbf16>
    %c511_i32_47 = arith.constant 511 : i32
    %109 = tpu.dynamic_rotate %83 by %c511_i32_47 dim 1 : vector<32x512xf32>, i32 -> vector<32x512xf32>
    %cst_48 = arith.constant 0.000000e+00 : f32
    %110 = vector.shape_cast %24 : vector<1x512xi1> to vector<1x512xi1>
    %111 = vector.broadcast %110 : vector<1x512xi1> to vector<32x512xi1>
    %112 = vector.broadcast %cst_48 : f32 to vector<32x512xf32>
    %113 = arith.select %111, %109, %112 : vector<32x512xi1>, vector<32x512xf32>
    %114 = arith.truncf %113 : vector<32x512xf32> to vector<32x512xbf16>
    %c497_i32_49 = arith.constant 497 : i32
    %115 = tpu.dynamic_rotate %83 by %c497_i32_49 dim 1 : vector<32x512xf32>, i32 -> vector<32x512xf32>
    %cst_50 = arith.constant 0.000000e+00 : f32
    %116 = vector.shape_cast %27 : vector<1x512xi1> to vector<1x512xi1>
    %117 = vector.broadcast %116 : vector<1x512xi1> to vector<32x512xi1>
    %118 = vector.broadcast %cst_50 : f32 to vector<32x512xf32>
    %119 = arith.select %117, %115, %118 : vector<32x512xi1>, vector<32x512xf32>
    %120 = arith.truncf %119 : vector<32x512xf32> to vector<32x512xbf16>
    %c496_i32_51 = arith.constant 496 : i32
    %121 = tpu.dynamic_rotate %83 by %c496_i32_51 dim 1 : vector<32x512xf32>, i32 -> vector<32x512xf32>
    %cst_52 = arith.constant 0.000000e+00 : f32
    %122 = vector.shape_cast %30 : vector<1x512xi1> to vector<1x512xi1>
    %123 = vector.broadcast %122 : vector<1x512xi1> to vector<32x512xi1>
    %124 = vector.broadcast %cst_52 : f32 to vector<32x512xf32>
    %125 = arith.select %123, %121, %124 : vector<32x512xi1>, vector<32x512xf32>
    %126 = arith.truncf %125 : vector<32x512xf32> to vector<32x512xbf16>
    %c495_i32_53 = arith.constant 495 : i32
    %127 = tpu.dynamic_rotate %83 by %c495_i32_53 dim 1 : vector<32x512xf32>, i32 -> vector<32x512xf32>
    %cst_54 = arith.constant 0.000000e+00 : f32
    %128 = vector.shape_cast %33 : vector<1x512xi1> to vector<1x512xi1>
    %129 = vector.broadcast %128 : vector<1x512xi1> to vector<32x512xi1>
    %130 = vector.broadcast %cst_54 : f32 to vector<32x512xf32>
    %131 = arith.select %129, %127, %130 : vector<32x512xi1>, vector<32x512xf32>
    %132 = arith.truncf %131 : vector<32x512xf32> to vector<32x512xbf16>
    %133 = tpu.concatenate %89, %95, %101, %107, %108, %114, %120, %126, %132 in 0 : vector<32x512xbf16>, vector<32x512xbf16>, vector<32x512xbf16>, vector<32x512xbf16>, vector<32x512xbf16>, vector<32x512xbf16>, vector<32x512xbf16>, vector<32x512xbf16>, vector<32x512xbf16> -> vector<288x512xbf16>
    %c0_55 = arith.constant 0 : index
    %c0_56 = arith.constant 0 : index
    %134 = vector.load %arg4[%c0_55, %c0_56] : memref<2x288xbf16, #tpu.memory_space<vmem>>, vector<2x288xbf16>
    %cst_57 = arith.constant dense<0.000000e+00> : vector<2x512xf32>
    %135 = tpu.matmul %134, %133, %cst_57 {dimension_numbers = #tpu.dot_dimension_numbers<[1], [0], [0], [1], [0, 0, 1, 1], [], []>} : vector<2x288xbf16>, vector<288x512xbf16>, vector<2x512xf32> -> vector<2x512xf32>
    %c0_58 = arith.constant 0 : index
    %c0_59 = arith.constant 0 : index
    %136 = vector.load %arg5[%c0_58, %c0_59] : memref<2x1xf32, #tpu.memory_space<vmem>>, vector<2x1xf32>
    %137 = vector.broadcast %136 : vector<2x1xf32> to vector<2x512xf32>
    %138 = arith.addf %135, %137 : vector<2x512xf32>
    %c0_60 = arith.constant 0 : index
    %c0_61 = arith.constant 0 : index
    %139 = vector.load %arg6[%c0_60, %c0_61] : memref<2x512xf32, #tpu.memory_space<vmem>>, vector<2x512xf32>
    tpu.vector_store %arg6[%c0_60, %c0_61], %138 {strides = array<i32>} : memref<2x512xf32, #tpu.memory_space<vmem>>, vector<2x512xf32>,
    return
  }
}

</mosaic_0001>

<bundles_post_ra>
// kernel: model_forward.1
= control target key start
LH: loop header
LB: loop body
LE: loop exit
PB: predicated region body
PF: predicated region fallthrough
CT: control target
= control target key end

     0   :  { %v4085_v6 = vmov 0   ;;  %s2120_s9 = smov 113   ;;  %s2121_s10 = smov 111   ;;  %s4032_s0 = inlined_call_operand.vmem [shape: f32[8,512], index: 0, kind: input, shape index: {}]   ;;  %s4033_s1 = inlined_call_operand.vmem [shape: f32[16,512], index: 1, kind: input, shape index: {}]   ;;  %s4034_s2 = inlined_call_operand.vmem [shape: bf16[32,72], index: 2, kind: input, shape index: {}]   ;;  %s4035_s3 = inlined_call_operand.vmem [shape: f32[32,1], index: 3, kind: input, shape index: {}]   ;;  %s4036_s4 = inlined_call_operand.vmem [shape: bf16[2,288], index: 4, kind: input, shape index: {}]   ;;  %s4037_s5 = inlined_call_operand.vmem [shape: f32[2,1], index: 5, kind: input, shape index: {}]   ;;  %s4038_s6 = inlined_call_operand.vmem [shape: f32[2,512], index: 6, kind: output, shape index: {0}]   ;;  %s4039_s7 = inlined_call_operand.hbm [shape: f32[1,1], index: 7, kind: output, shape index: {1}]  }
   0x1   :  { %v2175_v0 = vld [vmem:[%s4032_s0 + $0x8] sm:$0xff]  ;;  %v2180_v1 = vld [vmem:[%s4032_s0 + $0x10] sm:$0xff]  ;;  %v2185_v2 = vld [vmem:[%s4032_s0] sm:$0xff]  ;;  %516 = vmatprep.mubr.bf16.mxu0 %v4085_v6  ;;  %569 = vmatprep.mubr.bf16.mxu1 %v4085_v6 }
   0x2   :  { %v1715_v3 = vpack.i.bf16 %v2180_v1, %v2175_v0  ;;  %v1705_v4 = vpack.i.bf16 %v2175_v0, %v2185_v2  ;;  %v2194_v5 = vld [vmem:[%s4032_s0 + $0x18] sm:$0xff]  ;;  %1786 = vset.pattern.permute.xlu1 %v4085_v6  ;;  %1785 = vset.pattern.permute.xlu0 %v4085_v6 }
   0x3   :  { %v1710_v7 = vpack.i.bf16 %v2194_v5, %v2180_v1 }
   0x4   :  { %1716 = vrot.lane.b32.xlu1 %v1715_v3, %s2120_s9  ;;  %1706 = vrot.lane.b32.xlu0 %v1705_v4, %s2121_s10 }
   0x5   :  { %13 = vsyncpa [#allocation3], 0  ;;  %s2122_s11 = smov 112   ;;  %v1730_v8 = vpack.i.bf16 %v2194_v5, %v2185_v2  ;;  %s2123_s12 = smov 127   ;;  %v1760_v9 = vpack.i.bf16 %v2180_v1, %v2194_v5  ;;  %v433_v10 = vld [vmem:[%s4035_s3 + $0x18] sm:$0xff]  ;;  %v432_v11 = vld [vmem:[%s4035_s3 + $0x10] sm:$0xff]  ;;  %v33_v14 = vlaneseq }
   0x6   :  { %s2124_s13 = smov 1   ;;  %s2125_s14 = smov 15   ;;  %v430_v12 = vld [vmem:[%s4035_s3] sm:$0xff]  ;;  %v431_v13 = vld [vmem:[%s4035_s3 + $0x8] sm:$0xff]  ;;  %v4155_v36 = vmov 0  ;;  %v4157_v37 = vmov 0 }
   0x7   :  { %s2126_s15 = smov 16   ;;  %s2127_s16 = smov 17   ;;  %v1438_v15 = vld [vmem:[%s4033_s1 + $0x20] ss:$8 sm:$0xf]  ;;  %v2237_v16 = vshrl.u32 %v33_v14, 7 }
   0x8   :  { %1721 = vrot.lane.b32.xlu1 %v1715_v3, %s2122_s11  ;;  %1711 = vrot.lane.b32.xlu0 %v1710_v7, %s2121_s10  ;;  %v1436_v17 = vld [vmem:[%s4033_s1 + $0x6] ss:$8 sm:$0xf]  ;;  %v1437_v18 = vld [vmem:[%s4033_s1 + $0x7] ss:$8 sm:$0xf] }
   0x9   :  { %4154 = vst [vmem:[#allocation5_spill] sm:$0xff] %v2237_v16  ;;  %vm95_vm0 = vcmp.ne.f32.partialorder %v1438_v15, 0.0  ;;  %v2246_v19 = vsub.s32 1, %v2237_v16  ;;  %v2249_v20 = vsub.s32 3, %v2237_v16  ;;  %v2252_v21 = vsub.s32 0, %v2237_v16 }
   0xa   :  { %vm89_vm1 = vcmp.ne.f32.partialorder %v1436_v17, 0.0  ;;  %vm92_vm2 = vcmp.ne.f32.partialorder %v1437_v18, 0.0  ;;  %v381_v22 = vsel %vm95_vm0, 1, %v4085_v6  ;;  %v2256_v23 = vsub.s32 2, %v2237_v16 }
   0xb   :  { %v1435_v24 = vld [vmem:[%s4033_s1 + $0x5] ss:$8 sm:$0xf]  ;;  %v2261_v25 = vand.u32 127, %v33_v14  ;;  %v389_v26 = vrot.slane %v381_v22, %v2246_v19  ;;  %v2265_v27 = vsel %vm89_vm1, 1, %v4085_v6  ;;  %v2268_v28 = vsel %vm92_vm2, 1, %v4085_v6 }
   0xc   :  { %1731 = vrot.lane.b32.xlu1 %v1730_v8, %s2122_s11  ;;  %1726 = vrot.lane.b32.xlu0 %v1730_v8, %s2120_s9  ;;  %v397_v29 = vrot.slane %v381_v22, %v2249_v20  ;;  %v385_v30 = vrot.slane %v381_v22, %v2252_v21  ;;  %v1433_v31 = vld [vmem:[%s4033_s1 + $0x2] ss:$8 sm:$0xf]  ;;  %vm86_vm3 = vcmp.ne.f32.partialorder %v1435_v24, 0.0  ;;  %v393_v33 = vrot.slane %v381_v22, %v2256_v23 }
   0xd   :  { %v1434_v32 = vld [vmem:[%s4033_s1 + $0x3] ss:$8 sm:$0xf]  ;;  %v313_v34 = vrot.slane %v2265_v27, %v2246_v19  ;;  %v351_v35 = vrot.slane %v2268_v28, %v2246_v19  ;;  %vm4040_vm4 = vcmp.lt.s32.totalorder %v2261_v25, 112  ;;  %vm4041_vm5 = vcmp.lt.s32.totalorder %v2261_v25, 111 }
   0xe   :  { %vm2285_vm6 = vcmp.eq.s32.totalorder %v389_v26, 1  ;;  %vm80_vm7 = vcmp.ne.f32.partialorder %v1433_v31, 0.0  ;;  %vm2289_vm8 = vcmp.eq.s32.totalorder %v397_v29, 1  ;;  %vm2293_vm9 = vcmp.eq.s32.totalorder %v385_v30, 1 }
   0xf   :  { %v4156_v36 = vsel %vm2285_vm6, 4294967295, %v4155_v36  ;;  %v4158_v37 = vsel %vm2289_vm8, 4294967295, %v4157_v37  ;;  %v4160_v38 = vmov 0  ;;  %v2298_v39 = vsel %vm86_vm3, 1, %v4085_v6 }
  0x10   :  { %1741 = vrot.lane.b32.xlu1 %v1730_v8, %s2123_s12  ;;  %1736 = vrot.lane.b32.xlu0 %v1715_v3, %s2123_s12  ;;  %4159 = vst [vmem:[#allocation6_spill] sm:$0xff] %v4158_v37  ;;  %v4161_v38 = vsel %vm2293_vm9, 4294967295, %v4160_v38  ;;  %vm83_vm10 = vcmp.ne.f32.partialorder %v1434_v32, 0.0  ;;  %v321_v40 = vrot.slane %v2265_v27, %v2249_v20  ;;  %v359_v41 = vrot.slane %v2268_v28, %v2249_v20  ;;  %v73_v14 = vld [vmem:[%s4033_s1] ss:$8 sm:$0xf] }
  0x11   :  { %v309_v42 = vrot.slane %v2265_v27, %v2252_v21  ;;  %v347_v43 = vrot.slane %v2268_v28, %v2252_v21  ;;  %vm2311_vm12 = vcmp.eq.s32.totalorder %v393_v33, 1  ;;  %v4162_v46 = vmov 0 }
  0x12   :  { %v4163_v46 = vsel %vm2311_vm12, 4294967295, %v4162_v46  ;;  %vm2315_vm13 = vcmp.eq.s32.totalorder %v313_v34, 1  ;;  %v4165_v47 = vmov 0  ;;  %vm2319_vm14 = vcmp.eq.s32.totalorder %v351_v35, 1 }
  0x13   :  { %4164 = vst [vmem:[#allocation7_spill] sm:$0xff] %v4163_v46  ;;  %v4166_v47 = vsel %vm2315_vm13, 4294967295, %v4165_v47  ;;  %v4168_v48 = vmov 0  ;;  %v317_v49 = vrot.slane %v2265_v27, %v2256_v23  ;;  %v2327_v50 = vsel %vm80_vm7, 1, %v4085_v6 }
  0x14   :  { %1751 = vrot.lane.b32.xlu1 %v1705_v4, %s2124_s13  ;;  %1746 = vrot.lane.b32.xlu0 %v1705_v4, %s2125_s14  ;;  %4167 = vst [vmem:[#allocation8_spill] sm:$0xff] %v4166_v47  ;;  %v4169_v48 = vsel %vm2319_vm14, 4294967295, %v4168_v48  ;;  %v275_v53 = vrot.slane %v2298_v39, %v2246_v19  ;;  %v2333_v54 = vsel %vm83_vm10, 1, %v4085_v6  ;;  %v355_v55 = vrot.slane %v2268_v28, %v2256_v23  ;;  %v1432_v34 = vld [vmem:[%s4033_s1 + $0x1] ss:$8 sm:$0xf] }
  0x15   :  { %4170 = vst [vmem:[#allocation9_spill] sm:$0xff] %v4169_v48  ;;  %v283_v56 = vrot.slane %v2298_v39, %v2249_v20  ;;  %v271_v57 = vrot.slane %v2298_v39, %v2252_v21  ;;  %v279_v58 = vrot.slane %v2298_v39, %v2256_v23  ;;  %vm2345_vm0 = vcmp.eq.s32.totalorder %v309_v42, 1 }
  0x16   :  { %v4171_v60 = vmov 0  ;;  %vm2349_vm1 = vcmp.eq.s32.totalorder %v347_v43, 1  ;;  %v4174_v61 = vmov 0  ;;  %v199_v62 = vrot.slane %v2327_v50, %v2246_v19 }
  0x17   :  { %v4172_v60 = vsel %vm2345_vm0, 4294967295, %v4171_v60  ;;  %v4175_v61 = vsel %vm2349_vm1, 4294967295, %v4174_v61  ;;  %v195_v63 = vrot.slane %v2327_v50, %v2252_v21  ;;  %v207_v3 = vrot.slane %v2327_v50, %v2249_v20 }
  0x18   :  { %1761 = vrot.lane.b32.xlu1 %v1760_v9, %s2124_s13  ;;  %1756 = vrot.lane.b32.xlu0 %v1760_v9, %s2125_s14  ;;  %4173 = vst [vmem:[#allocation10_spill] sm:$0xff] %v4172_v60  ;;  %4176 = vst [vmem:[#allocation11_spill] sm:$0xff] %v4175_v61  ;;  %vm2363_vm2 = vcmp.eq.s32.totalorder %v321_v40, 1  ;;  %vm2367_vm3 = vcmp.eq.s32.totalorder %v359_v41, 1  ;;  %vm2383_vm10 = vcmp.eq.s32.totalorder %v275_v53, 1  ;;  %v4183_v24 = vmov 0 }
  0x19   :  { %v4184_v24 = vsel %vm2383_vm10, 4294967295, %v4183_v24  ;;  %v203_v28 = vrot.slane %v2327_v50, %v2256_v23  ;;  %v241_v29 = vrot.slane %v2333_v54, %v2256_v23  ;;  %vm2397_vm7 = vcmp.eq.s32.totalorder %v271_v57, 1 }
  0x1a   :  { %4185 = vst [vmem:[#allocation14_spill] sm:$0xff] %v4184_v24  ;;  %v4186_v33 = vmov 0  ;;  %vm2418_vm15 = vcmp.eq.s32.totalorder %v317_v49, 1  ;;  %vm2422_vm11 = vcmp.eq.s32.totalorder %v355_v55, 1  ;;  %v4195_v49 = vmov 0 }
  0x1b   :  { %v4187_v33 = vsel %vm2397_vm7, 4294967295, %v4186_v33 }
  0x1c   :  { %1771 = vrot.lane.b32.xlu1 %v1705_v4, %s2126_s15  ;;  %1766 = vrot.lane.b32.xlu0 %v1705_v4, %s2127_s16  ;;  %4188 = vst [vmem:[#allocation15_spill] sm:$0xff] %v4187_v33 }
  0x20   :  { %1781 = vrot.lane.b32.xlu1 %v1760_v9, %s2126_s15  ;;  %1776 = vrot.lane.b32.xlu0 %v1760_v9, %s2127_s16  ;;  %v4177_v9 = vmov 0 }
  0x21   :  { %v4178_v9 = vsel %vm2363_vm2, 4294967295, %v4177_v9 }
  0x22   :  { %4179 = vst [vmem:[#allocation12_spill] sm:$0xff] %v4178_v9 }
  0x24   :  { %451 = vperm.xlu1 %1786, %v433_v10   ;;  %446 = vperm.xlu0 %1785, %v432_v11   ;;  %v4180_v10 = vmov 0  ;;  %v237_v11 = vrot.slane %v2333_v54, %v2246_v19 }
  0x25   :  { %v4181_v10 = vsel %vm2367_vm3, 4294967295, %v4180_v10 }
  0x26   :  { %4182 = vst [vmem:[#allocation13_spill] sm:$0xff] %v4181_v10 }
  0x28   :  { %436 = vperm.xlu1 %1786, %v430_v12   ;;  %441 = vperm.xlu0 %1785, %v431_v13   ;;  %v233_v12 = vrot.slane %v2333_v54, %v2252_v21  ;;  %v245_v13 = vrot.slane %v2333_v54, %v2249_v20 }
  0x76   :  { %v2309_v44 = vpop.permute.xlu1 %1716  ;;  %v1707_v45 = vpop.permute.xlu0 %1706 }
  0x77   :  { %v1709_v51 = vunpack.i.h.bf16 %v1707_v45  ;;  %v1708_v52 = vunpack.i.l.bf16 %v1707_v45  ;;  %v1719_v26 = vunpack.i.h.bf16 %v2309_v44  ;;  %v1718_v27 = vunpack.i.l.bf16 %v2309_v44 }
  0x78   :  { %v4189_v45 = vmov 0 }
  0x79   :  { %v379_v59 = vsel %vm4041_vm5, %v1708_v52, %v1709_v51  ;;  %v4190_v45 = vsel %vm2418_vm15, 4294967295, %v4189_v45  ;;  %vm2473_vm15 = vcmp.eq.s32.totalorder %v195_v63, 1 }
  0x7a   :  { %v2359_v4 = vpop.permute.xlu1 %1721  ;;  %v1712_v7 = vpop.permute.xlu0 %1711  ;;  %v402_v8 = vsel %vm2293_vm9, %v379_v59, 0.0  ;;  %4191 = vst [vmem:[#allocation16_spill] sm:$0xff] %v4190_v45  ;;  %vm4198_vm9 = vcmp.lt.s32.totalorder %v2261_v25, 113 }
  0x7b   :  { %v1724_v15 = vunpack.i.h.bf16 %v2359_v4  ;;  %v1723_v17 = vunpack.i.l.bf16 %v2359_v4  ;;  %v1714_v18 = vunpack.i.h.bf16 %v1712_v7  ;;  %v1713_v22 = vunpack.i.l.bf16 %v1712_v7 }
  0x7c   :  { %v422_v32 = vpack.c.bf16 %v402_v8, %v402_v8  ;;  %v302_v55 = vsel %vm4198_vm9, %v1718_v27, %v1719_v26 }
  0x7d   :  { %v378_v30 = vsel %vm4041_vm5, %v1709_v51, %v1713_v22  ;;  %v380_v31 = vsel %vm4041_vm5, %v1714_v18, %v1708_v52  ;;  %v340_v35 = vsel %vm4040_vm4, %v1723_v17, %v1724_v15  ;;  %v377_v43 = vsel %vm4041_vm5, %v1713_v22, %v1714_v18 }
  0x7e   :  { %v2408_v39 = vpop.permute.xlu1 %1731  ;;  %v2410_v40 = vpop.permute.xlu0 %1726  ;;  %v403_v41 = vsel %vm2285_vm6, %v378_v30, 0.0  ;;  %v405_v42 = vsel %vm2289_vm8, %v380_v31, 0.0  ;;  %v4192_v51 = vmov 0  ;;  %vm2432_vm8 = vcmp.eq.s32.totalorder %v283_v56, 1 }
  0x7f   :  { %v4193_v51 = vsel %vm2422_vm11, 4294967295, %v4192_v51  ;;  %v1734_v52 = vunpack.i.h.bf16 %v2408_v39  ;;  %v1733_v53 = vunpack.i.l.bf16 %v2408_v39  ;;  %v1729_v57 = vunpack.i.h.bf16 %v2410_v40 }
  0x80   :  { %4194 = vst [vmem:[#allocation17_spill] sm:$0xff] %v4193_v51  ;;  %v1728_v59 = vunpack.i.l.bf16 %v2410_v40  ;;  %v4196_v49 = vsel %vm2432_vm8, 4294967295, %v4195_v49  ;;  %v423_v7 = vpack.c.bf16 %v403_v41, %v403_v41  ;;  %v425_v8 = vpack.c.bf16 %v405_v42, %v405_v42 }
  0x81   :  { %4197 = vst [vmem:[#allocation18_spill] sm:$0xff] %v4196_v49  ;;  %vm2440_vm6 = vcmp.eq.s32.totalorder %v199_v62, 1  ;;  %v4199_v18 = vmov 0  ;;  %vm2444_vm11 = vcmp.eq.s32.totalorder %v237_v11, 1  ;;  %v4201_v22 = vmov 0 }
  0x82   :  { %v4200_v18 = vsel %vm2440_vm6, 4294967295, %v4199_v18  ;;  %v4202_v22 = vsel %vm2444_vm11, 4294967295, %v4201_v22  ;;  %v1443_v56 = vpack.c.bf16 %v340_v35, %v302_v55  ;;  %vm4203_vm5 = vcmp.lt.s32.totalorder %v2261_v25, 112  ;;  %v1737_v40 = vpop.permute.xlu0 %1736 }
  0x83   :  { %v341_v30 = vsel %vm4203_vm5, %v1733_v53, %v1723_v17  ;;  %v404_v31 = vsel %vm2311_vm12, %v377_v43, 0.0  ;;  %vm2456_vm8 = vcmp.eq.s32.totalorder %v279_v58, 1  ;;  %v4204_v62 = vmov 0  ;;  %vm4208_vm4 = vmmov %vm4203_vm5  ;;  %v1742_v58 = vpop.permute.xlu1 %1741 }
  0x84   :  { %v4205_v62 = vsel %vm2456_vm8, 4294967295, %v4204_v62  ;;  %vm4207_vm6 = vcmp.ne.f32.partialorder %v73_v14, 0.0  ;;  %v342_v35 = vsel %vm4208_vm4, %v1734_v52, %v1733_v53  ;;  %vm4209_vm5 = vmmov %vm4198_vm9  ;;  %vm4211_vm11 = vcmask 1043456  }
  0x85   :  { %4206 = vst [vmem:[#allocation19_spill] sm:$0xff] %v4205_v62  ;;  %v2462_v11 = vsel %vm4207_vm6, 1, %v4085_v6  ;;  %v303_v17 = vsel %vm4209_vm5, %v1728_v59, %v1718_v27  ;;  %vm4210_vm12 = vmmov %vm4209_vm5  ;;  %1441 = vmatprep.subr.msk.bf16.mxu0 %vm4211_vm11, %v423_v7  ;;  %v4214_v14 = vmov 0  ;;  %vm2477_vm6 = vcmp.eq.s32.totalorder %v233_v12, 1 }
  0x86   :  { %v304_v39 = vsel %vm4210_vm12, %v1729_v57, %v1728_v59  ;;  %vm4212_vm9 = vmmov %vm4211_vm11  ;;  %v4215_v14 = vsel %vm2473_vm15, 4294967295, %v4214_v14  ;;  %v1744_v27 = vunpack.i.h.bf16 %v1742_v58  ;;  %v1743_v43 = vunpack.i.l.bf16 %v1742_v58 }
  0x87   :  { %1468 = vmatprep.subr.msk.bf16.mxu1 %vm4212_vm9, %v425_v8  ;;  %vm4213_vm8 = vmmov %vm4212_vm9  ;;  %vm2484_vm4 = vcmp.eq.s32.totalorder %v207_v3, 1  ;;  %v4218_v53 = vmov 0  ;;  %vm2488_vm11 = vcmp.eq.s32.totalorder %v245_v13, 1  ;;  %v1739_v12 = vunpack.i.h.bf16 %v1737_v40 }
  0x88   :  { %v473_v41 = vsel %vm4213_vm8, %v422_v32, 0  ;;  %v4219_v53 = vsel %vm2484_vm4, 4294967295, %v4218_v53  ;;  %v4220_v32 = vmov 0  ;;  %vm4222_vm8 = vcmp.ne.f32.partialorder %v1432_v34, 0.0  ;;  %vm4223_vm12 = vmpackc.low %vm2319_vm14, %vm2315_vm13 }
  0x89   :  { %491 = vmatpush1.bf16.msra.mxu0 %v473_v41  ;;  %v4221_v32 = vsel %vm2488_vm11, 4294967295, %v4220_v32  ;;  %v2494_v63 = vsel %vm4222_vm8, 1, %v4085_v6  ;;  %v1738_v59 = vunpack.i.l.bf16 %v1737_v40  ;;  %v424_v55 = vpack.c.bf16 %v404_v31, %v404_v31 }
  0x8a   :  { %1444 = vmatprep.subr.msk.bf16.mxu0 %vm4223_vm12, %v1443_v56  ;;  %v123_v3 = vrot.slane %v2462_v11, %v2246_v19  ;;  %v1446_v13 = vpack.c.bf16 %v341_v30, %v303_v17  ;;  %v1470_v34 = vpack.c.bf16 %v342_v35, %v304_v39  ;;  %v119_v7 = vrot.slane %v2462_v11, %v2252_v21  ;;  %v1752_v35 = vpop.permute.xlu1 %1751  ;;  %v1747_v17 = vpop.permute.xlu0 %1746 }
  0x8b   :  { %v131_v8 = vrot.slane %v2462_v11, %v2249_v20  ;;  %vm4224_vm12 = vcmp.lt.s32.totalorder %v2261_v25, 127  ;;  %vm4059_vm5 = vmmov 1   ;;  %v4229_v58 = vmov 0 }
  0x8c   :  { %v266_v56 = vsel %vm4224_vm12, %v1744_v27, %v1743_v43  ;;  %vm4225_vm9 = vmmov %vm4224_vm12  ;;  %vm2532_vm12 = vcmp.eq.s32.totalorder %v203_v28, 1  ;;  %v161_v40 = vrot.slane %v2494_v63, %v2246_v19  ;;  %v1754_v4 = vunpack.i.h.bf16 %v1752_v35 }
  0x8d   :  { %v264_v30 = vsel %vm4225_vm9, %v1738_v59, %v1739_v12  ;;  %vm4226_vm13 = vmmov %vm4225_vm9  ;;  %v4230_v58 = vsel %vm2532_vm12, 4294967295, %v4229_v58  ;;  %vm4232_vm9 = vcmp.lt.s32.totalorder %v2261_v25, 113  ;;  %v1748_v44 = vunpack.i.l.bf16 %v1747_v17 }
  0x8e   :  { %v265_v31 = vsel %vm4226_vm13, %v1743_v43, %v1738_v59  ;;  %vm2525_vm14 = vmpackc.low %vm2383_vm10, %vm4059_vm5  ;;  %vm4231_vm13 = vcmp.lt.s32.totalorder %v2261_v25, 112  ;;  %v301_v43 = vsel %vm4232_vm9, %v1719_v26, %v1729_v57  ;;  %v1449_v50 = vpack.c.bf16 %v264_v30, %v2175_v0  ;;  %v1762_v54 = vpop.permute.xlu1 %1761 }
  0x8f   :  { %v339_v41 = vsel %vm4231_vm13, %v1724_v15, %v1734_v52  ;;  %vm4233_vm5 = vcmask 1043456   ;;  %vm4234_vm10 = vmpackc.low %vm2349_vm1, %vm2345_vm0  ;;  %v1753_v15 = vunpack.i.l.bf16 %v1752_v35  ;;  %v1749_v52 = vunpack.i.h.bf16 %v1747_v17 }
  0x90   :  { %v479_v28 = vsel %vm4233_vm5, %v424_v55, 0  ;;  %1447 = vmatpush1.bf16.msk.msra.mxu0 %vm4234_vm10, %v1446_v13  ;;  %vm4235_vm13 = vmmov 1   ;;  %v1476_v0 = vpack.c.bf16 %v266_v56, %v2194_v5  ;;  %v1452_v57 = vpack.c.bf16 %v265_v31, %v2185_v2  ;;  %vm4238_vm10 = vmpackc.low %vm2367_vm3, %vm2363_vm2 }
  0x91   :  { %544 = vmatpush1.bf16.msra.mxu1 %v479_v28  ;;  %vm2557_vm9 = vmpackc.low %vm2397_vm7, %vm4235_vm13  ;;  %vm4239_vm5 = vnez %v4190_v45  ;;  %vm4240_vm8 = vnez %v4193_v51  ;;  %1450 = vmatprep.subr.msk.bf16.mxu0 %vm2525_vm14, %v1449_v50  ;;  %vm2577_vm7 = vcmp.eq.s32.totalorder %v241_v29, 1  ;;  %v4241_v5 = vmov 0  ;;  %v1757_v29 = vpop.permute.xlu0 %1756 }
  0x92   :  { %1471 = vmatprep.subr.msk.bf16.mxu1 %vm4238_vm10, %v1470_v34  ;;  %v4242_v5 = vsel %vm2577_vm7, 4294967295, %v4241_v5  ;;  %v157_v2 = vrot.slane %v2494_v63, %v2252_v21  ;;  %v1473_v59 = vpack.c.bf16 %v339_v41, %v301_v43  ;;  %vm4243_vm10 = vcmp.lt.s32.totalorder %v2261_v25, 127 }
  0x93   :  { %v263_v55 = vsel %vm4243_vm10, %v1739_v12, %v1744_v27  ;;  %vm4244_vm2 = vcmp.lt.s32.totalorder %v2261_v25, 1  ;;  %vm4245_vm0 = vcmp.lt.s32.totalorder %v2261_v25, 15  ;;  %vm4246_vm14 = vnez %v4196_v49 }
  0x94   :  { %v227_v13 = vsel %vm4244_vm2, %v1753_v15, %v1754_v4  ;;  %v189_v34 = vsel %vm4245_vm0, %v1748_v44, %v1749_v52  ;;  %vm1475_vm3 = vmpackc.low %vm4246_vm14, %vm4235_vm13  ;;  %v1764_v30 = vunpack.i.h.bf16 %v1762_v54  ;;  %v1763_v31 = vunpack.i.l.bf16 %v1762_v54  ;;  %1453 = vmatpush1.bf16.msk.msra.mxu0 %vm2557_vm9, %v1452_v57 }
  0x95   :  { %v1455_v56 = vpack.c.bf16 %v227_v13, %v189_v34  ;;  %v1759_v35 = vunpack.i.h.bf16 %v1757_v29  ;;  %vm4247_vm10 = vnez %v4200_v18  ;;  %vm4248_vm2 = vnez %v4202_v22  ;;  %vm4249_vm0 = vmpackc.low %vm4240_vm8, %vm4239_vm5 }
  0x96   :  { %1474 = vmatpush1.bf16.msk.msra.mxu1 %vm4249_vm0, %v1473_v59  ;;  %v1758_v27 = vunpack.i.l.bf16 %v1757_v29  ;;  %vm4250_vm14 = vnez %v4205_v62  ;;  %vm2610_vm9 = vcmp.eq.s32.totalorder %v123_v3, 1  ;;  %v4253_v17 = vmov 0  ;;  %vm1457_vm5 = vmpackc.low %vm2477_vm6, %vm2473_vm15 }
  0x97   :  { %vm2606_vm7 = vmpackc.low %vm4250_vm14, %vm4235_vm13  ;;  %v4254_v17 = vsel %vm2610_vm9, 4294967295, %v4253_v17  ;;  %v169_v39 = vrot.slane %v2494_v63, %v2249_v20  ;;  %v127_v41 = vrot.slane %v2462_v11, %v2256_v23  ;;  %1477 = vmatprep.subr.msk.bf16.mxu1 %vm1475_vm3, %v1476_v0  ;;  %vm4256_vm0 = vcmp.lt.s32.totalorder %v2261_v25, 1 }
  0x98   :  { %4255 = vst [vmem:[#allocation20_spill] sm:$0xff] %v4254_v17  ;;  %v225_v43 = vsel %vm4256_vm0, %v1764_v30, %v1763_v31  ;;  %vm4257_vm1 = vmmov %vm4256_vm0  ;;  %vm4259_vm14 = vcmp.lt.s32.totalorder %v2261_v25, 15  ;;  %v1479_v26 = vpack.c.bf16 %v263_v55, %v2180_v1  ;;  %v4263_v1 = vmov 0 }
  0x99   :  { %v226_v50 = vsel %vm4257_vm1, %v1754_v4, %v1764_v30  ;;  %vm4258_vm13 = vmmov %vm4256_vm0  ;;  %v188_v3 = vsel %vm4259_vm14, %v1749_v52, %v1759_v35  ;;  %v1772_v4 = vpop.permute.xlu1 %1771  ;;  %v165_v29 = vrot.slane %v2494_v63, %v2256_v23  ;;  %v4268_v63 = vmov 0 }
  0x9a   :  { %v228_v28 = vsel %vm4258_vm13, %v1763_v31, %v1753_v15  ;;  %vm4260_vm3 = vmmov %vm4259_vm14  ;;  %v1767_v15 = vpop.permute.xlu0 %1766  ;;  %vm2644_vm13 = vcmp.eq.s32.totalorder %v161_v40, 1  ;;  %v1773_v55 = vunpack.i.l.bf16 %v1772_v4  ;;  %v1485_v13 = vpack.c.bf16 %v226_v50, %v188_v3  ;;  %1480 = vmatpush1.bf16.msk.msra.mxu1 %vm2606_vm7, %v1479_v26 }
  0x9b   :  { %v187_v0 = vsel %vm4260_vm3, %v1759_v35, %v1758_v27  ;;  %vm4261_vm0 = vmmov %vm4260_vm3  ;;  %v4264_v1 = vsel %vm2644_vm13, 4294967295, %v4263_v1  ;;  %v1769_v34 = vunpack.i.h.bf16 %v1767_v15  ;;  %v1768_v54 = vunpack.i.l.bf16 %v1767_v15 }
  0x9c   :  { %v190_v57 = vsel %vm4261_vm0, %v1758_v27, %v1748_v44  ;;  %vm4262_vm1 = vmpackc.low %vm4248_vm2, %vm4247_vm10  ;;  %4265 = vst [vmem:[#allocation21_spill] sm:$0xff] %v4264_v1  ;;  %v1482_v59 = vpack.c.bf16 %v225_v43, %v187_v0  ;;  %v1774_v44 = vunpack.i.h.bf16 %v1772_v4  ;;  %vm4266_vm3 = vcmp.lt.s32.totalorder %v2261_v25, 16 }
  0x9d   :  { %1456 = vmatprep.subr.msk.bf16.mxu0 %vm4262_vm1, %v1455_v56  ;;  %vm1481_vm14 = vmpackc.low %vm2488_vm11, %vm2484_vm4  ;;  %v1458_v52 = vpack.c.bf16 %v228_v28, %v190_v57  ;;  %vm4267_vm0 = vnez %v4242_v5  ;;  %vm2666_vm1 = vcmp.eq.s32.totalorder %v119_v7, 1  ;;  %v1782_v30 = vpop.permute.xlu1 %1781  ;;  %v4272_v35 = vmov 0 }
  0x9e   :  { %v151_v56 = vsel %vm4266_vm3, %v1773_v55, %v1774_v44  ;;  %1483 = vmatprep.subr.msk.bf16.mxu1 %vm1481_vm14, %v1482_v59  ;;  %vm1484_vm7 = vmpackc.low %vm4267_vm0, %vm2532_vm12  ;;  %v4269_v63 = vsel %vm2666_vm1, 4294967295, %v4268_v63  ;;  %vm4271_vm3 = vcmp.lt.s32.totalorder %v2261_v25, 17  ;;  %v1777_v31 = vpop.permute.xlu0 %1776  ;;  %vm2676_vm14 = vcmp.eq.s32.totalorder %v157_v2, 1  ;;  %v2107_v59 = vld [vmem:[%s4034_s2] sm:$0xff]  }
  0x9f   :  { %1459 = vmatpush1.bf16.msk.msra.mxu0 %vm1457_vm5, %v1458_v52  ;;  %4270 = vst [vmem:[#allocation22_spill] sm:$0xff] %v4269_v63  ;;  %v113_v40 = vsel %vm4271_vm3, %v1768_v54, %v1769_v34  ;;  %v4273_v35 = vsel %vm2676_vm14, 4294967295, %v4272_v35  ;;  %vm2683_vm8 = vcmp.eq.s32.totalorder %v131_v8, 1  ;;  %v4275_v7 = vmov 0  ;;  %1486 = vmatpush1.bf16.msk.msra.mxu1 %vm1484_vm7, %v1485_v13  ;;  %vm4291_vm0 = vmpackc.low %vm2644_vm13, %vm2610_vm9 }
  0xa0   :  { %4274 = vst [vmem:[#allocation23_spill] sm:$0xff] %v4273_v35  ;;  %v4276_v7 = vsel %vm2683_vm8, 4294967295, %v4275_v7  ;;  %vm2687_vm12 = vcmp.eq.s32.totalorder %v169_v39, 1  ;;  %v4278_v27 = vmov 0  ;;  %v1461_v12 = vpack.c.bf16 %v151_v56, %v113_v40 }
  0xa1   :  { %4277 = vst [vmem:[#allocation24_spill] sm:$0xff] %v4276_v7  ;;  %v4279_v27 = vsel %vm2687_vm12, 4294967295, %v4278_v27  ;;  %v1784_v43 = vunpack.i.h.bf16 %v1782_v30  ;;  %v1783_v50 = vunpack.i.l.bf16 %v1782_v30  ;;  %v1779_v28 = vunpack.i.h.bf16 %v1777_v31 }
  0xa2   :  { %4280 = vst [vmem:[#allocation25_spill] sm:$0xff] %v4279_v27  ;;  %v1778_v2 = vunpack.i.l.bf16 %v1777_v31  ;;  %vm2691_vm3 = vcmp.eq.s32.totalorder %v127_v41, 1  ;;  %v4281_v3 = vmov 0  ;;  %vm2695_vm5 = vcmp.eq.s32.totalorder %v165_v29, 1  ;;  %1462 = vmatprep.subr.msk.bf16.mxu0 %vm4291_vm0, %v1461_v12  ;;  %v447_v13 = vpop.permute.xlu0 %446 }
  0xa3   :  { %v4282_v3 = vsel %vm2691_vm3, 4294967295, %v4281_v3  ;;  %v4284_v11 = vmov 0  ;;  %vm4287_vm4 = vcmp.lt.s32.totalorder %v2261_v25, 16  ;;  %vm4290_vm7 = vcmp.lt.s32.totalorder %v2261_v25, 17  ;;  %vm1490_vm0 = vmpackc.low %vm2695_vm5, %vm2691_vm3 }
  0xa4   :  { %4283 = vst [vmem:[#allocation26_spill] sm:$0xff] %v4282_v3  ;;  %v4285_v11 = vsel %vm2695_vm5, 4294967295, %v4284_v11  ;;  %v149_v8 = vsel %vm4287_vm4, %v1784_v43, %v1783_v50  ;;  %vm4288_vm10 = vmmov %vm4287_vm4  ;;  %v112_v0 = vsel %vm4290_vm7, %v1769_v34, %v1779_v28  ;;  %vm4343_vm3 = vnez %v4161_v38 }
  0xa5   :  { %4286 = vst [vmem:[#allocation27_spill] sm:$0xff] %v4285_v11  ;;  %v150_v39 = vsel %vm4288_vm10, %v1774_v44, %v1784_v43  ;;  %vm4289_vm15 = vmmov %vm4287_vm4  ;;  %v2108_v44 = vld [vmem:[%s4034_s2 + $0x8] sm:$0xff]  }
  0xa6   :  { %v152_v26 = vsel %vm4289_vm15, %v1783_v50, %v1773_v55  ;;  %vm1463_vm4 = vmpackc.low %vm2676_vm14, %vm2666_vm1  ;;  %v1491_v4 = vpack.c.bf16 %v150_v39, %v112_v0  ;;  %v452_v55 = vpop.permute.xlu1 %451  ;;  %v442_v31 = vpop.permute.xlu0 %441 }
  0xa7   :  { %vm4292_vm11 = vmmov %vm4290_vm7 }
  0xa8   :  { %v111_v41 = vsel %vm4292_vm11, %v1779_v28, %v1778_v2  ;;  %vm4293_vm10 = vmmov %vm4290_vm7  ;;  %vm464_vm11 = vcmask 588800   ;;  %vm53_vm7 = vcmask 1040384  }
  0xa9   :  { %v114_v57 = vsel %vm4293_vm10, %v1778_v2, %v1768_v54  ;;  %vm1487_vm15 = vmpackc.low %vm2687_vm12, %vm2683_vm8  ;;  %v1488_v52 = vpack.c.bf16 %v149_v8, %v111_v41 }
  0xaa   :  { %v1464_v15 = vpack.c.bf16 %v152_v26, %v114_v57  ;;  %v437_v34 = vpop.permute.xlu1 %436  ;;  %vm4151_vm8 = vmpackc.low %vm4343_vm3, %vm4343_vm3 }
  0xab   :  { %1489 = vmatprep.subr.msk.bf16.mxu1 %vm1487_vm15, %v1488_v52 }
  0xac   :  { %1465 = vmatpush1.bf16.msk.msra.mxu0 %vm1463_vm4, %v1464_v15  ;;  %1492 = vmatpush1.bf16.msk.msra.mxu1 %vm1490_vm0, %v1491_v4  ;;  %vm4310_vm4 = vcmp.lt.s32.totalorder %v2261_v25, 111 }
  0xad   :  { %vm4312_vm10 = vmmov %vm4310_vm4 }
  0xae   :  { %vm4314_vm15 = vmmov %vm4310_vm4 }
  0xaf   :  { %1466 = vmatmul.mubr.msk.bf16.vlgmr.msra.gmra.mxu0 %vm464_vm11, %v2107_v59  ;;  %1493 = vmatmul.mubr.msk.bf16.vlgmr.msra.gmra.mxu1 %vm464_vm11, %v2107_v59  ;;  %vm4316_vm0 = vmmov %vm4310_vm4 }
  0xb0   :  { %526 = vmatprep.mubr.bf16.mxu0 %v4085_v6  ;;  %579 = vmatprep.mubr.bf16.mxu1 %v4085_v6 }
  0xb7   :  { %1467 = vmatmul.mubr.msk.bf16.gmra.mxu0 %vm464_vm11, %v2108_v44  ;;  %1494 = vmatmul.mubr.msk.bf16.gmra.mxu1 %vm464_vm11, %v2108_v44  ;;  %vm4317_vm11 = vcmp.lt.s32.totalorder %v2261_v25, 1 }
  0xb8   :  { %1300 = vmatprep.mubr.bf16.mxu1 %v4085_v6 }
 0x16f   :  { %v518_v54 = vpop.f32.mrf.mxu0  ;;  %v571_v29 = vpop.f32.mrf.mxu1 }
 0x170   :  { %v2737_v40 = vadd.f32 %v518_v54, %v437_v34  ;;  %v2739_v12 = vadd.f32 %v571_v29, %v437_v34 }
 0x171   :  { %v520_v56 = vpop.f32.mrf.mxu0  ;;  %v573_v30 = vpop.f32.mrf.mxu1 }
 0x172   :  { %v590_v39 = vmax.f32 %v2737_v40, 0.0  ;;  %v592_v41 = vmax.f32 %v2739_v12, 0.0  ;;  %v521_v40 = vadd.f32 %v520_v56, %v437_v34  ;;  %v574_v37 = vadd.f32 %v573_v30, %v437_v34 }
 0x173   :  { %v522_v43 = vpop.f32.mrf.mxu0  ;;  %v575_v28 = vpop.f32.mrf.mxu1 }
 0x174   :  { %v523_v50 = vadd.f32 %v522_v43, %v442_v31  ;;  %v2741_v2 = vadd.f32 %v575_v28, %v442_v31  ;;  %v591_v46 = vmax.f32 %v521_v40, 0.0 }
 0x175   :  { %v524_v8 = vpop.f32.mrf.mxu0  ;;  %v577_v0 = vpop.f32.mrf.mxu1 }
 0x176   :  { %v594_v26 = vmax.f32 %v523_v50, 0.0  ;;  %v596_v57 = vmax.f32 %v2741_v2, 0.0  ;;  %v525_v12 = vadd.f32 %v524_v8, %v442_v31  ;;  %v578_v50 = vadd.f32 %v577_v0, %v442_v31 }
 0x177   :  { %v528_v4 = vpop.f32.mrf.mxu0  ;;  %v581_v15 = vpop.f32.mrf.mxu1 }
 0x178   :  { %v2746_v52 = vpack.i.bf16 %v594_v26, %v590_v39  ;;  %v2748_v44 = vpack.i.bf16 %v596_v57, %v592_v41  ;;  %v595_v49 = vmax.f32 %v525_v12, 0.0  ;;  %v597_v56 = vmax.f32 %v578_v50, 0.0 }
 0x179   :  { %v530_v59 = vpop.f32.mrf.mxu0  ;;  %v583_v54 = vpop.f32.mrf.mxu1  ;;  %v529_v33 = vadd.f32 %v528_v4, %v447_v13  ;;  %v582_v9 = vadd.f32 %v581_v15, %v447_v13 }
 0x17a   :  { %1793 = vrot.lane.b32.xlu1 %v2746_v52, %s2121_s10  ;;  %1788 = vrot.lane.b32.xlu0 %v2748_v44, %s2121_s10  ;;  %v584_v24 = vadd.f32 %v583_v54, %v447_v13  ;;  %v2766_v4 = vpack.i.bf16 %v595_v49, %v591_v46  ;;  %v2790_v54 = vpack.c.bf16 %v596_v57, %v592_v41 }
 0x17b   :  { %v532_v29 = vpop.f32.mrf.mxu0  ;;  %v585_v43 = vpop.f32.mrf.mxu1  ;;  %v598_v34 = vmax.f32 %v529_v33, 0.0  ;;  %v600_v30 = vmax.f32 %v582_v9, 0.0 }
 0x17c   :  { %v533_v28 = vadd.f32 %v532_v29, %v452_v55  ;;  %v586_v2 = vadd.f32 %v585_v43, %v452_v55  ;;  %v593_v29 = vmax.f32 %v574_v37, 0.0  ;;  %v531_v43 = vadd.f32 %v530_v59, %v447_v13  ;;  %4301 = vst [vmem:[#allocation35_spill] sm:$0xff] %v2790_v54 }
 0x17d   :  { %v534_v6 = vpop.f32.mrf.mxu0  ;;  %v587_v62 = vpop.f32.mrf.mxu1  ;;  %v601_v37 = vmax.f32 %v584_v24, 0.0  ;;  %v2780_v13 = vpack.c.bf16 %v594_v26, %v590_v39  ;;  %v2129_v39 = vmov 1966171168  }
 0x17e   :  { %1803 = vrot.lane.b32.xlu1 %v2748_v44, %s2124_s13  ;;  %1798 = vrot.lane.b32.xlu0 %v2746_v52, %s2124_s13  ;;  %v602_v31 = vmax.f32 %v533_v28, 0.0  ;;  %v535_v8 = vadd.f32 %v534_v6, %v452_v55  ;;  %v604_v0 = vmax.f32 %v586_v2, 0.0  ;;  %v588_v45 = vadd.f32 %v587_v62, %v452_v55 }
 0x17f   :  { %v2768_v40 = vpack.i.bf16 %v597_v56, %v593_v29  ;;  %v599_v62 = vmax.f32 %v531_v43, 0.0  ;;  %v2778_v55 = vpack.c.bf16 %v595_v49, %v591_v46  ;;  %4297 = vst [vmem:[#allocation31_spill] sm:$0xff] %v2780_v13  ;;  %v2788_v24 = vpack.c.bf16 %v597_v56, %v593_v29 }
 0x180   :  { %v603_v15 = vmax.f32 %v535_v8, 0.0  ;;  %v605_v12 = vmax.f32 %v588_v45, 0.0  ;;  %v2037_v6 = vpack.i.bf16 %v604_v0, %v600_v30  ;;  %v2052_v50 = vpack.i.bf16 %v602_v31, %v598_v34 }
 0x181   :  { %v2776_v33 = vpack.c.bf16 %v602_v31, %v598_v34  ;;  %4296 = vst [vmem:[#allocation30_spill] sm:$0xff] %v2778_v55  ;;  %v2784_v45 = vpack.c.bf16 %v604_v0, %v600_v30  ;;  %4300 = vst [vmem:[#allocation34_spill] sm:$0xff] %v2788_v24  ;;  %v1207_v26 = vunpack.c.l.s4 %v2129_v39  ;;  %v1495_v31 = vld.sshfl [vmem:[%s4036_s4] sm:$0x13 pattern:$0x75316420] }
 0x182   :  { %1813 = vrot.lane.b32.xlu1 %v2748_v44, %s2125_s14  ;;  %1808 = vrot.lane.b32.xlu0 %v2746_v52, %s2125_s14  ;;  %v2774_v9 = vpack.c.bf16 %v603_v15, %v599_v62  ;;  %v2782_v59 = vpack.c.bf16 %v605_v12, %v601_v37  ;;  %v1937_v46 = vpack.i.bf16 %v603_v15, %v599_v62  ;;  %v1191_v34 = vld [vmem:[%s4037_s5] sm:$0x3] }
 0x183   :  { %4295 = vst [vmem:[#allocation29_spill] sm:$0xff] %v2776_v33  ;;  %4299 = vst [vmem:[#allocation33_spill] sm:$0xff] %v2784_v45  ;;  %v1957_v49 = vpack.i.bf16 %v605_v12, %v601_v37  ;;  %v1208_v28 = vunpack.c.0.s8 %v1207_v26  ;;  %v1205_v0 = vcombine.high %v1495_v31, %v1495_v31  ;;  %v27_v12 = vld [vmem:[%s4032_s0] ss:$8 sm:$0xf] }
 0x184   :  { %4294 = vst [vmem:[#allocation28_spill] sm:$0xff] %v2774_v9  ;;  %4298 = vst [vmem:[#allocation32_spill] sm:$0xff] %v2782_v59 }
 0x185   :  { %v1211_v8 = vsub.s32 %v1208_v28, %v2237_v16 }
 0x186   :  { %1823 = vrot.lane.b32.xlu1 %v2748_v44, %s2126_s15  ;;  %1818 = vrot.lane.b32.xlu0 %v2746_v52, %s2126_s15 }
 0x187   :  { %v2877_v29 = vrot.slane %v1205_v0, %v1211_v8  ;;  %v2932_v60 = vrot.slane %v1495_v31, %v1211_v8 }
 0x189   :  { %1259 = vmatprep.mubr.bf16.mxu0 %v2877_v29  ;;  %4306 = vst [vmem:[#allocation40_spill] sm:$0xff] %v2932_v60 }
 0x18a   :  { %1833 = vrot.lane.b32.xlu1 %v2766_v4, %s2121_s10  ;;  %1828 = vrot.lane.b32.xlu0 %v2746_v52, %s2127_s16 }
 0x18e   :  { %1838 = vrot.lane.b32.xlu1 %v2766_v4, %s2124_s13  ;;  %1843 = vrot.lane.b32.xlu0 %v2768_v40, %s2124_s13 }
 0x192   :  { %1848 = vrot.lane.b32.xlu1 %v2766_v4, %s2125_s14  ;;  %1853 = vrot.lane.b32.xlu0 %v2768_v40, %s2125_s14 }
 0x196   :  { %1858 = vrot.lane.b32.xlu1 %v2766_v4, %s2126_s15  ;;  %1863 = vrot.lane.b32.xlu0 %v2768_v40, %s2126_s15 }
 0x19a   :  { %1868 = vrot.lane.b32.xlu1 %v2766_v4, %s2127_s16  ;;  %1873 = vrot.lane.b32.xlu0 %v2768_v40, %s2127_s16 }
 0x19e   :  { %1883 = vrot.lane.b32.xlu1 %v2052_v50, %s2121_s10  ;;  %1878 = vrot.lane.b32.xlu0 %v2037_v6, %s2121_s10 }
 0x1a2   :  { %1893 = vrot.lane.b32.xlu1 %v2037_v6, %s2124_s13  ;;  %1888 = vrot.lane.b32.xlu0 %v2052_v50, %s2124_s13 }
 0x1a6   :  { %1903 = vrot.lane.b32.xlu1 %v2037_v6, %s2125_s14  ;;  %1898 = vrot.lane.b32.xlu0 %v2052_v50, %s2125_s14 }
 0x1aa   :  { %1913 = vrot.lane.b32.xlu1 %v2037_v6, %s2126_s15  ;;  %1908 = vrot.lane.b32.xlu0 %v2052_v50, %s2126_s15 }
 0x1ae   :  { %1923 = vrot.lane.b32.xlu1 %v2037_v6, %s2127_s16  ;;  %1918 = vrot.lane.b32.xlu0 %v2052_v50, %s2127_s16 }
 0x1b2   :  { %1928 = vrot.lane.b32.xlu1 %v2037_v6, %s2122_s11  ;;  %1933 = vrot.lane.b32.xlu0 %v2052_v50, %s2122_s11 }
 0x1b6   :  { %1938 = vrot.lane.b32.xlu1 %v1937_v46, %s2121_s10  ;;  %1953 = vrot.lane.b32.xlu0 %v2766_v4, %s2122_s11 }
 0x1ba   :  { %1943 = vrot.lane.b32.xlu1 %v1937_v46, %s2124_s13  ;;  %1958 = vrot.lane.b32.xlu0 %v1957_v49, %s2124_s13 }
 0x1be   :  { %1948 = vrot.lane.b32.xlu1 %v2748_v44, %s2127_s16  ;;  %1973 = vrot.lane.b32.xlu0 %v2746_v52, %s2122_s11 }
 0x1c2   :  { %1963 = vrot.lane.b32.xlu1 %v1937_v46, %s2125_s14  ;;  %1978 = vrot.lane.b32.xlu0 %v1957_v49, %s2125_s14 }
 0x1c6   :  { %1968 = vrot.lane.b32.xlu1 %v2748_v44, %s2122_s11  ;;  %1993 = vrot.lane.b32.xlu0 %v2052_v50, %s2120_s9 }
 0x1ca   :  { %1983 = vrot.lane.b32.xlu1 %v1937_v46, %s2126_s15  ;;  %1998 = vrot.lane.b32.xlu0 %v1957_v49, %s2126_s15 }
 0x1ce   :  { %1988 = vrot.lane.b32.xlu1 %v2037_v6, %s2120_s9  ;;  %2013 = vrot.lane.b32.xlu0 %v2766_v4, %s2120_s9 }
 0x1d2   :  { %2003 = vrot.lane.b32.xlu1 %v1937_v46, %s2127_s16  ;;  %2023 = vrot.lane.b32.xlu0 %v1957_v49, %s2127_s16 }
 0x1d6   :  { %2008 = vrot.lane.b32.xlu1 %v2768_v40, %s2122_s11  ;;  %2028 = vrot.lane.b32.xlu0 %v1937_v46, %s2122_s11 }
 0x1da   :  { %2018 = vrot.lane.b32.xlu1 %v2748_v44, %s2120_s9  ;;  %2033 = vrot.lane.b32.xlu0 %v2746_v52, %s2120_s9 }
 0x1de   :  { %2038 = vrot.lane.b32.xlu1 %v2037_v6, %s2123_s12  ;;  %2048 = vrot.lane.b32.xlu0 %v1937_v46, %s2120_s9 }
 0x1e2   :  { %2043 = vrot.lane.b32.xlu1 %v1957_v49, %s2122_s11  ;;  %2053 = vrot.lane.b32.xlu0 %v2052_v50, %s2123_s12 }
 0x1e6   :  { %2058 = vrot.lane.b32.xlu1 %v2768_v40, %s2120_s9  ;;  %2068 = vrot.lane.b32.xlu0 %v1937_v46, %s2123_s12 }
 0x1ea   :  { %2063 = vrot.lane.b32.xlu1 %v1957_v49, %s2120_s9  ;;  %2073 = vrot.lane.b32.xlu0 %v2766_v4, %s2123_s12 }
 0x1ec   :  { %v2856_v41 = vpop.permute.xlu1 %1793  ;;  %v2858_v57 = vpop.permute.xlu0 %1788 }
 0x1ed   :  { %4302 = vst [vmem:[#allocation36_spill] sm:$0xff] %v2856_v41  ;;  %4303 = vst [vmem:[#allocation37_spill] sm:$0xff] %v2858_v57  ;;  %v4315_v47 = vunpack.i.h.bf16 %v2856_v41 }
 0x1ee   :  { %2078 = vrot.lane.b32.xlu1 %v2748_v44, %s2123_s12  ;;  %2083 = vrot.lane.b32.xlu0 %v2746_v52, %s2123_s12 }
 0x1f0   :  { %v2864_v2 = vpop.permute.xlu1 %1803  ;;  %v2866_v56 = vpop.permute.xlu0 %1798 }
 0x1f1   :  { %v1805_v31 = vunpack.i.l.bf16 %v2864_v2 }
 0x1f2   :  { %2088 = vrot.lane.b32.xlu1 %v1957_v49, %s2123_s12  ;;  %2093 = vrot.lane.b32.xlu0 %v2768_v40, %s2123_s12 }
 0x1f4   :  { %v2875_v44 = vpop.permute.xlu1 %1813  ;;  %v2879_v52 = vpop.permute.xlu0 %1808 }
 0x1f6   :  { %2098 = vrot.lane.b32.xlu1 %v1957_v49, %s2121_s10  ;;  %2103 = vrot.lane.b32.xlu0 %v2768_v40, %s2121_s10  ;;  %v1431_v40 = vld [vmem:[%s4032_s0 + $0x1] ss:$8 sm:$0xf]  ;;  %s2130_s10 = smov [#allocation2]  }
 0x1f7   :  { %v30_v62 = vsub.f32 %v27_v12, %v1431_v40 }
 0x1f8   :  { %v2885_v43 = vpop.permute.xlu1 %1823  ;;  %v2890_v30 = vpop.permute.xlu0 %1818 }
 0x1f9   :  { %v31_v49 = vand.u32 2147483647, %v30_v62 }
 0x1fa   :  { %1194 = vperm.xlu0 %1785, %v1191_v34  }
 0x1fb   :  { %v36_v28 = vrot.slane %v31_v49, %v2252_v21  ;;  %v40_v0 = vrot.slane %v31_v49, %v2246_v19  ;;  %v44_v16 = vrot.slane %v31_v49, %v2256_v23  ;;  %v48_v24 = vrot.slane %v31_v49, %v2249_v20 }
 0x1fc   :  { %v2892_v4 = vpop.permute.xlu1 %1833  ;;  %v2894_v15 = vpop.permute.xlu0 %1828  ;;  %v1815_v20 = vunpack.i.l.bf16 %v2875_v44 }
 0x1fd   :  { %v54_v12 = vsel %vm53_vm7, %v36_v28, 0.0  ;;  %v55_v40 = vsel %vm53_vm7, %v40_v0, 0.0  ;;  %v57_v59 = vsel %vm53_vm7, %v44_v16, 0.0  ;;  %v59_v55 = vsel %vm53_vm7, %v48_v24, 0.0  ;;  %vm4318_vm7 = vmmov %vm4317_vm11 }
 0x1fe   :  { %v56_v45 = vadd.f32 %v55_v40, %v54_v12  ;;  %v1806_v24 = vunpack.i.h.bf16 %v2864_v2  ;;  %v1800_v0 = vunpack.i.l.bf16 %v2866_v56  ;;  %v1836_v12 = vunpack.i.h.bf16 %v2892_v4 }
 0x1ff   :  { %v1835_v40 = vunpack.i.l.bf16 %v2892_v4  ;;  %v4313_v4 = vunpack.i.l.bf16 %v2856_v41  ;;  %v1830_v22 = vunpack.i.l.bf16 %v2894_v15 }
 0x200   :  { %v2902_v6 = vpop.permute.xlu1 %1838  ;;  %v2904_v50 = vpop.permute.xlu0 %1843  ;;  %v58_v21 = vadd.f32 %v57_v59, %v56_v45  ;;  %v2942_v59 = vcombine.high %v2932_v60, %v2932_v60 }
 0x201   :  { %v1841_v16 = vunpack.i.h.bf16 %v2902_v6  ;;  %v1846_v60 = vunpack.i.h.bf16 %v2904_v50  ;;  %v2986_v10 = vsel %vm4314_vm15, %v4313_v4, %v1835_v40 }
 0x202   :  { %v60_v9 = vadd.f32 %v59_v55, %v58_v21  ;;  %v1816_v21 = vunpack.i.h.bf16 %v2875_v44  ;;  %v1840_v55 = vunpack.i.l.bf16 %v2902_v6  ;;  %v4309_v6 = vunpack.i.h.bf16 %v2858_v57 }
 0x203   :  { %v2992_v44 = vsel %vm4316_vm0, %v4315_v47, %v1836_v12 }
 0x204   :  { %v2906_v37 = vpop.permute.xlu1 %1848  ;;  %v2908_v46 = vpop.permute.xlu0 %1853  ;;  %v2974_v45 = vsel %vm4310_vm4, %v1836_v12, %v4309_v6  ;;  %vm4319_vm4 = vmmov %vm4318_vm7 }
 0x205   :  { %v1850_v48 = vunpack.i.l.bf16 %v2906_v37  ;;  %vm4321_vm15 = vmmov %vm4319_vm4 }
 0x206   :  { %vm4322_vm0 = vmmov %vm4319_vm4 }
 0x207   :  { %v3018_v4 = vsel %vm4322_vm0, %v1806_v24, %v1846_v60 }
 0x208   :  { %v2910_v39 = vpop.permute.xlu1 %1858  ;;  %v2912_v26 = vpop.permute.xlu0 %1863 }
 0x20c   :  { %v2916_v34 = vpop.permute.xlu1 %1868  ;;  %v2919_v54 = vpop.permute.xlu0 %1873 }
 0x210   :  { %v2922_v62 = vpop.permute.xlu1 %1883  ;;  %v2924_v13 = vpop.permute.xlu0 %1878 }
 0x211   :  { %4304 = vst [vmem:[#allocation38_spill] sm:$0xff] %v2922_v62  ;;  %4305 = vst [vmem:[#allocation39_spill] sm:$0xff] %v2924_v13  ;;  %v4135_v17 = vunpack.i.l.bf16 %v2924_v13 }
 0x214   :  { %v2926_v19 = vpop.permute.xlu1 %1893  ;;  %v2928_v33 = vpop.permute.xlu0 %1888 }
 0x215   :  { %v1895_v27 = vunpack.i.l.bf16 %v2926_v19 }
 0x218   :  { %v2930_v23 = vpop.permute.xlu1 %1903  ;;  %v2934_v28 = vpop.permute.xlu0 %1898 }
 0x21a   :  { %61 = vadd.xlane.f32.xlu1 %v60_v9  ;;  %v1801_v9 = vunpack.i.h.bf16 %v2866_v56  ;;  %v1845_v56 = vunpack.i.l.bf16 %v2904_v50  ;;  %v4311_v50 = vunpack.i.l.bf16 %v2858_v57  ;;  %v1851_v57 = vunpack.i.h.bf16 %v2906_v37 }
 0x21c   :  { %v2938_v49 = vpop.permute.xlu1 %1913  ;;  %v2948_v8 = vpop.permute.xlu0 %1908  ;;  %v2980_v2 = vsel %vm4312_vm10, %v1835_v40, %v4311_v50  ;;  %v2996_v6 = vsel %vm4317_vm11, %v1801_v9, %v1841_v16  ;;  %v3000_v50 = vsel %vm4318_vm7, %v1800_v0, %v1840_v55  ;;  %v3006_v40 = vsel %vm4319_vm4, %v1840_v55, %v1805_v31  ;;  %vm4320_vm10 = vmmov %vm4319_vm4 }
 0x21d   :  { %v3010_v47 = vsel %vm4320_vm10, %v1841_v16, %v1806_v24  ;;  %v3014_v12 = vsel %vm4321_vm15, %v1805_v31, %v1845_v56  ;;  %v1587_v37 = vpack.c.bf16 %v2974_v45, %v2980_v2  ;;  %vm4324_vm11 = vmmov %vm4322_vm0  ;;  %v1856_v45 = vunpack.i.h.bf16 %v2908_v46 }
 0x21e   :  { %v3027_v3 = vsel %vm4324_vm11, %v1845_v56, %v1800_v0  ;;  %vm4325_vm7 = vmmov %vm4322_vm0  ;;  %v1855_v2 = vunpack.i.l.bf16 %v2908_v46  ;;  %vm4328_vm4 = vcmp.lt.s32.totalorder %v2261_v25, 15  ;;  %v4329_v55 = vunpack.i.l.bf16 %v2879_v52 }
 0x21f   :  { %v3031_v16 = vsel %vm4325_vm7, %v1846_v60, %v1801_v9  ;;  %v4327_v60 = vunpack.i.h.bf16 %v2879_v52  ;;  %vm4330_vm10 = vmmov %vm4328_vm4 }
 0x220   :  { %v2962_v51 = vpop.permute.xlu1 %1923  ;;  %v2968_v61 = vpop.permute.xlu0 %1918  ;;  %v3055_v7 = vsel %vm4330_vm10, %v4329_v55, %v1850_v48  ;;  %vm4331_vm15 = vmmov %vm4328_vm4 }
 0x221   :  { %4307 = vst [vmem:[#allocation41_spill] sm:$0xff] %v2962_v51  ;;  %4308 = vst [vmem:[#allocation42_spill] sm:$0xff] %v2968_v61  ;;  %v3049_v9 = vsel %vm4328_vm4, %v4327_v60, %v1851_v57  ;;  %v3061_v0 = vsel %vm4331_vm15, %v1851_v57, %v1816_v21  ;;  %v4136_v60 = vunpack.i.h.bf16 %v2924_v13  ;;  %v4338_v57 = vunpack.i.l.bf16 %v2922_v62 }
 0x222   :  { %vm4333_vm0 = vmmov %vm4328_vm4  ;;  %vm4336_vm4 = vcmp.lt.s32.totalorder %v2261_v25, 111  ;;  %v1896_v51 = vunpack.i.h.bf16 %v2926_v19 }
 0x223   :  { %v3071_v46 = vsel %vm4333_vm0, %v1850_v48, %v1815_v20  ;;  %vm4334_vm11 = vmmov %vm4333_vm0 }
 0x224   :  { %v3020_v41 = vpop.permute.xlu1 %1928  ;;  %v3033_v31 = vpop.permute.xlu0 %1933  ;;  %v3077_v56 = vsel %vm4334_vm11, %v1815_v20, %v1855_v2  ;;  %vm4335_vm7 = vmmov %vm4333_vm0  ;;  %vm4342_vm11 = vnez %v4156_v36 }
 0x225   :  { %4323 = vst [vmem:[#allocation43_spill] sm:$0xff] %v3020_v41  ;;  %4326 = vst [vmem:[#allocation44_spill] sm:$0xff] %v3033_v31  ;;  %v3081_v24 = vsel %vm4335_vm7, %v1816_v21, %v1856_v45 }
 0x226   :  { %vm4337_vm10 = vmmov %vm4336_vm4 }
 0x227   :  { %vm4339_vm15 = vmmov %vm4336_vm4 }
 0x228   :  { %v1939_v63 = vpop.permute.xlu1 %1938  ;;  %v3067_v55 = vpop.permute.xlu0 %1953  ;;  %vm4341_vm0 = vmmov %vm4336_vm4 }
 0x229   :  { %v1941_v31 = vunpack.i.h.bf16 %v1939_v63  ;;  %v1940_v41 = vunpack.i.l.bf16 %v1939_v63  ;;  %4332 = vst [vmem:[#allocation45_spill] sm:$0xff] %v3067_v55  ;;  %v4340_v55 = vunpack.i.h.bf16 %v2922_v62  ;;  %vm1580_vm7 = vmpackc.low %vm4342_vm11, %vm4342_vm11  ;;  %v1891_v62 = vunpack.i.h.bf16 %v2928_v33 }
 0x22b   :  { %v1157_v63 = vsel %vm4336_vm4, %v1941_v31, %v4136_v60  ;;  %v1156_v48 = vsel %vm4337_vm10, %v1940_v41, %v4135_v17  ;;  %v1160_v20 = vsel %vm4339_vm15, %v4338_v57, %v1940_v41  ;;  %v1161_v21 = vsel %vm4341_vm0, %v4340_v55, %v1941_v31 }
 0x22c   :  { %v1861_v17 = vunpack.i.h.bf16 %v2910_v39  ;;  %v1860_v60 = vunpack.i.l.bf16 %v2910_v39  ;;  %v1581_v13 = vpack.c.bf16 %v1157_v63, %v1156_v48  ;;  %v1584_v41 = vpack.c.bf16 %v1161_v21, %v1160_v20  ;;  %v1944_v57 = vpop.permute.xlu1 %1943  ;;  %v1959_v61 = vpop.permute.xlu0 %1958 }
 0x22d   :  { %v1890_v31 = vunpack.i.l.bf16 %v2928_v33  ;;  %v1946_v55 = vunpack.i.h.bf16 %v1944_v57  ;;  %v1945_v11 = vunpack.i.l.bf16 %v1944_v57  ;;  %v1961_v35 = vunpack.i.h.bf16 %v1959_v61 }
 0x22e   :  { %v1960_v1 = vunpack.i.l.bf16 %v1959_v61  ;;  %1582 = vmatprep.subr.msk.bf16.mxu1 %vm1580_vm7, %v1581_v13  ;;  %v4344_v39 = vunpack.i.l.bf16 %v2879_v52  ;;  %vm4345_vm10 = vcmp.lt.s32.totalorder %v2261_v25, 15  ;;  %v4346_v63 = vunpack.i.h.bf16 %v2879_v52 }
 0x22f   :  { %vm4347_vm15 = vmmov %vm4345_vm10  ;;  %vm4348_vm0 = vcmp.lt.s32.totalorder %v2261_v25, 1  ;;  %1585 = vmatpush1.bf16.msk.msra.mxu1 %vm4151_vm8, %v1584_v41  ;;  %v4350_v13 = vunpack.i.h.bf16 %v2890_v30  ;;  %v4353_v41 = vunpack.i.l.bf16 %v2890_v30  ;;  %vm4354_vm8 = vcmp.lt.s32.totalorder %v2261_v25, 16 }
 0x230   :  { %v3120_v33 = vsel %vm4345_vm10, %v1855_v2, %v4344_v39  ;;  %v3126_v48 = vsel %vm4347_vm15, %v1856_v45, %v4346_v63  ;;  %v865_v61 = vsel %vm4348_vm0, %v1891_v62, %v1946_v55  ;;  %vm4349_vm4 = vmmov %vm4348_vm0  ;;  %vm4351_vm15 = vcmp.lt.s32.totalorder %v2261_v25, 16  ;;  %v3150_v21 = vpop.permute.xlu1 %1948  ;;  %1588 = vmatprep.subr.msk.bf16.mxu1 %vm1580_vm7, %v1587_v37  ;;  %v3170_v36 = vpop.permute.xlu0 %1973 }
 0x231   :  { %v864_v19 = vsel %vm4349_vm4, %v1890_v31, %v1945_v11  ;;  %vm4152_vm10 = vmpackc.low %vm4248_vm2, %vm4248_vm2  ;;  %v3144_v52 = vsel %vm4351_vm15, %v4350_v13, %v1861_v17  ;;  %v856_v2 = vsel %vm4348_vm0, %v1895_v27, %v1960_v1  ;;  %v3164_v57 = vsel %vm4354_vm8, %v4353_v41, %v1860_v60 }
 0x232   :  { %v1497_v45 = vpack.c.bf16 %v865_v61, %v864_v19  ;;  %vm4352_vm4 = vmmov %vm4348_vm0  ;;  %v868_v39 = vsel %vm4348_vm0, %v1960_v1, %v1890_v31  ;;  %v1615_v37 = vpack.c.bf16 %v3061_v0, %v3071_v46  ;;  %vm4358_vm8 = vnez %v4221_v32 }
 0x233   :  { %v857_v20 = vsel %vm4352_vm4, %v1896_v51, %v1961_v35  ;;  %vm1499_vm15 = vmpackc.low %vm2477_vm6, %vm2477_vm6  ;;  %v1518_v1 = vpack.c.bf16 %v3126_v48, %v3120_v33  ;;  %v1527_v38 = vpack.c.bf16 %v3144_v52, %v3164_v57  ;;  %v1951_v0 = vunpack.i.h.bf16 %v3150_v21  ;;  %v4435_v33 = vld [vmem:[#allocation24_spill] sm:$0xff] }
 0x234   :  { %vm4355_vm4 = vmmov %vm4348_vm0  ;;  %v1594_v61 = vpack.c.bf16 %v857_v20, %v856_v2  ;;  %1498 = vmatprep.subr.msk.bf16.mxu0 %vm4152_vm10, %v1497_v45  ;;  %v1901_v45 = vunpack.i.h.bf16 %v2934_v28 }
 0x235   :  { %v869_v63 = vsel %vm4355_vm4, %v1961_v35, %v1891_v62  ;;  %vm4356_vm11 = vmmov %vm4348_vm0  ;;  %v1612_v35 = vpack.c.bf16 %v3081_v24, %v3077_v56  ;;  %v4362_v62 = vunpack.i.l.bf16 %v2885_v43 }
 0x236   :  { %v860_v19 = vsel %vm4356_vm11, %v1945_v11, %v1895_v27  ;;  %vm4357_vm7 = vmmov %vm4348_vm0  ;;  %v1500_v41 = vpack.c.bf16 %v869_v63, %v868_v39  ;;  %v1866_v27 = vunpack.i.h.bf16 %v2912_v26  ;;  %v4359_v11 = vpack.c.bf16 %v2992_v44, %v2986_v10 }
 0x237   :  { %v861_v13 = vsel %vm4357_vm7, %v1946_v55, %v1896_v51  ;;  %v1865_v51 = vunpack.i.l.bf16 %v2912_v26  ;;  %vm4360_vm4 = vmpackc.low %vm4343_vm3, %vm4343_vm3  ;;  %vm4361_vm11 = vnez %v4242_v5  ;;  %vm4363_vm0 = vcmp.lt.s32.totalorder %v2261_v25, 16  ;;  %v1964_v55 = vpop.permute.xlu1 %1963 }
 0x238   :  { %1591 = vmatpush1.bf16.msk.msra.mxu1 %vm4360_vm4, %v4359_v11  ;;  %vm4153_vm7 = vmpackc.low %vm4361_vm11, %vm4361_vm11  ;;  %v3207_v31 = vsel %vm4363_vm0, %v1860_v60, %v4362_v62  ;;  %v4364_v26 = vunpack.i.h.bf16 %v2885_v43  ;;  %v1906_v44 = vunpack.i.h.bf16 %v2930_v23  ;;  %1501 = vmatpush1.bf16.msk.msra.mxu0 %vm1499_vm15, %v1500_v41  ;;  %v1905_v60 = vunpack.i.l.bf16 %v2930_v23  ;;  %v1979_v23 = vpop.permute.xlu0 %1978 }
 0x239   :  { %vm4365_vm10 = vmmov %vm4363_vm0  ;;  %v1597_v2 = vpack.c.bf16 %v861_v13, %v860_v19  ;;  %v1966_v20 = vunpack.i.h.bf16 %v1964_v55  ;;  %v1900_v39 = vunpack.i.l.bf16 %v2934_v28  ;;  %v1965_v63 = vunpack.i.l.bf16 %v1964_v55 }
 0x23a   :  { %v3213_v10 = vsel %vm4365_vm10, %v1861_v17, %v4364_v26  ;;  %v4366_v17 = vpack.c.bf16 %v2996_v6, %v3000_v50  ;;  %vm4367_vm3 = vmpackc.low %vm4248_vm2, %vm4248_vm2  ;;  %v1981_v19 = vunpack.i.h.bf16 %v1979_v23  ;;  %v1980_v13 = vunpack.i.l.bf16 %v1979_v23 }
 0x23b   :  { %vm4368_vm10 = vmpackc.low %vm4358_vm8, %vm4358_vm8  ;;  %vm4369_vm0 = vcmask 261120   ;;  %vm4370_vm4 = vnez %v4215_v14  ;;  %v1627_v6 = vpack.c.bf16 %v3213_v10, %v3207_v31  ;;  %v4371_v50 = vmov %v4362_v62 }
 0x23c   :  { %1504 = vmatprep.subr.msk.bf16.mxu0 %vm4367_vm3, %v4366_v17  ;;  %1595 = vmatprep.subr.msk.bf16.mxu1 %vm4368_vm10, %v1594_v61  ;;  %vm4372_vm3 = vcmp.lt.s32.totalorder %v2261_v25, 16  ;;  %vm4373_vm10 = vcmp.lt.s32.totalorder %v2261_v25, 15  ;;  %v1871_v41 = vunpack.i.h.bf16 %v2916_v34  ;;  %v4377_v55 = vpack.c.bf16 %v3031_v16, %v3027_v3  ;;  %vm4384_vm6 = vmpackc.low %vm4358_vm8, %vm4358_vm8 }
 0x23d   :  { %1592 = vmatmul.mubr.msk.bf16.vlgmr.msra.gmra.mxu1 %vm4369_vm0, %v2942_v59  ;;  %v3251_v28 = vsel %vm4372_vm3, %v4371_v50, %v1865_v51  ;;  %v793_v61 = vsel %vm4373_vm10, %v1901_v45, %v1966_v20  ;;  %vm4374_vm0 = vmmov %vm4373_vm10  ;;  %vm4378_vm10 = vnez %v4200_v18  ;;  %v4383_v16 = vpack.c.bf16 %v3018_v4, %v3014_v12 }
 0x23e   :  { %1598 = vmatpush1.bf16.msk.msra.mxu1 %vm4153_vm7, %v1597_v2  ;;  %1341 = vmatprep.mubr.bf16.mxu1 %v2877_v29  ;;  %v792_v11 = vsel %vm4374_vm0, %v1900_v39, %v1965_v63  ;;  %vm4375_vm2 = vmmov %vm4374_vm0  ;;  %v3276_v29 = vpop.permute.xlu1 %1968  ;;  %v4379_v2 = vunpack.i.h.bf16 %v2885_v43  ;;  %v3299_v43 = vpop.permute.xlu0 %1993  ;;  %v4388_v4 = vunpack.i.l.bf16 %v2890_v30  ;;  %v1911_v5 = vunpack.i.h.bf16 %v2948_v8 }
 0x23f   :  { %v784_v62 = vsel %vm4375_vm2, %v1905_v60, %v1980_v13  ;;  %vm4376_vm3 = vmmov %vm4374_vm0  ;;  %1507 = vmatpush1.bf16.msk.msra.mxu0 %vm1499_vm15, %v4377_v55  ;;  %vm4380_vm2 = vcmp.lt.s32.totalorder %v2261_v25, 16  ;;  %v1509_v23 = vpack.c.bf16 %v793_v61, %v792_v11  ;;  %1601 = vmatprep.subr.msk.bf16.mxu1 %vm4384_vm6, %v4383_v16  ;;  %vm4385_vm15 = vnez %v4219_v53 }
 0x240   :  { %v785_v26 = vsel %vm4376_vm3, %v1906_v44, %v1981_v19  ;;  %v3285_v17 = vsel %vm4380_vm2, %v4379_v2, %v1866_v27  ;;  %vm4381_vm3 = vmmov %vm4374_vm0  ;;  %v1870_v61 = vunpack.i.l.bf16 %v2916_v34  ;;  %v1916_v2 = vunpack.i.h.bf16 %v2938_v49 }
 0x241   :  { %v796_v3 = vsel %vm4381_vm3, %v1980_v13, %v1900_v39  ;;  %vm4382_vm7 = vmmov %vm4374_vm0  ;;  %v1606_v12 = vpack.c.bf16 %v785_v26, %v784_v62  ;;  %v4390_v13 = vunpack.i.h.bf16 %v2890_v30  ;;  %v1624_v30 = vpack.c.bf16 %v3285_v17, %v3251_v28 }
 0x242   :  { %v797_v42 = vsel %vm4382_vm7, %v1981_v19, %v1901_v45  ;;  %vm1605_vm2 = vmpackc.low %vm4385_vm15, %vm4385_vm15  ;;  %v4399_v26 = vpack.c.bf16 %v3049_v9, %v3055_v7  ;;  %v1999_v55 = vpop.permute.xlu0 %1998 }
 0x243   :  { %vm4386_vm3 = vmmov %vm4374_vm0  ;;  %v1512_v19 = vpack.c.bf16 %v797_v42, %v796_v3  ;;  %v2001_v3 = vunpack.i.h.bf16 %v1999_v55  ;;  %v2000_v42 = vunpack.i.l.bf16 %v1999_v55  ;;  %v4419_v55 = vld [vmem:[#allocation44_spill] sm:$0xff] }
 0x244   :  { %v788_v39 = vsel %vm4386_vm3, %v1965_v63, %v1905_v60  ;;  %vm4387_vm7 = vmmov %vm4374_vm0  ;;  %vm4389_vm0 = vcmp.lt.s32.totalorder %v2261_v25, 16  ;;  %v1875_v60 = vunpack.i.l.bf16 %v2919_v54  ;;  %vm4395_vm3 = vnez %v4230_v58 }
 0x245   :  { %v789_v45 = vsel %vm4387_vm7, %v1966_v20, %v1906_v44  ;;  %v3312_v32 = vsel %vm4389_vm0, %v1865_v51, %v4388_v4  ;;  %vm4391_vm8 = vmmov %vm4389_vm0  ;;  %v4393_v51 = vpack.c.bf16 %v3010_v47, %v3006_v40  ;;  %v1876_v47 = vunpack.i.h.bf16 %v2919_v54  ;;  %v1984_v44 = vpop.permute.xlu1 %1983 }
 0x246   :  { %v3318_v50 = vsel %vm4391_vm8, %v1866_v27, %v4390_v13  ;;  %vm4392_vm6 = vmpackc.low %vm4378_vm10, %vm4378_vm10  ;;  %v4396_v27 = vunpack.i.h.bf16 %v2894_v15  ;;  %vm4397_vm8 = vcmp.lt.s32.totalorder %v2261_v25, 17  ;;  %v1910_v20 = vunpack.i.l.bf16 %v2948_v8  ;;  %v3434_v14 = vpop.permute.xlu0 %2013 }
 0x247   :  { %1510 = vmatprep.subr.msk.bf16.mxu0 %vm4392_vm6, %v1509_v23  ;;  %vm4394_vm0 = vmpackc.low %vm4361_vm11, %vm4361_vm11  ;;  %v1609_v63 = vpack.c.bf16 %v789_v45, %v788_v39  ;;  %v1986_v11 = vunpack.i.h.bf16 %v1984_v44  ;;  %v1985_v62 = vunpack.i.l.bf16 %v1984_v44  ;;  %v1915_v23 = vunpack.i.l.bf16 %v2938_v49 }
 0x248   :  { %1604 = vmatpush1.bf16.msk.msra.mxu1 %vm4394_vm0, %v4393_v51  ;;  %vm1608_vm7 = vmpackc.low %vm4395_vm3, %vm4395_vm3  ;;  %v3346_v40 = vsel %vm4397_vm8, %v4396_v27, %v1871_v41  ;;  %vm4402_vm10 = vcmp.lt.s32.totalorder %v2261_v25, 16  ;;  %v1530_v4 = vpack.c.bf16 %v3318_v50, %v3312_v32  ;;  %vm4421_vm3 = vcmp.lt.s32.totalorder %v2261_v25, 17 }
 0x249   :  { %vm4398_vm11 = vmpackc.low %vm4370_vm4, %vm4370_vm4  ;;  %1607 = vmatprep.subr.msk.bf16.mxu1 %vm1605_vm2, %v1606_v12  ;;  %v721_v7 = vsel %vm4402_vm10, %v1911_v5, %v1986_v11  ;;  %v3418_v15 = vpop.permute.xlu1 %1988  ;;  %v1935_v54 = vunpack.i.l.bf16 %v4419_v55 }
 0x24a   :  { %1513 = vmatpush1.bf16.msk.msra.mxu0 %vm4398_vm11, %v1512_v19  ;;  %vm4400_vm0 = vmmov %vm4397_vm8  ;;  %v712_v19 = vsel %vm4402_vm10, %v1915_v23, %v2000_v42 }
 0x24b   :  { %1516 = vmatprep.subr.msk.bf16.mxu0 %vm4392_vm6, %v4399_v26  ;;  %v3375_v8 = vsel %vm4400_vm0, %v1830_v22, %v1870_v61  ;;  %vm4401_vm8 = vmmov %vm4400_vm0 }
 0x24c   :  { %v3381_v18 = vsel %vm4401_vm8, %v1875_v60, %v1830_v22  ;;  %vm4403_vm11 = vmmov %vm4402_vm10  ;;  %1610 = vmatpush1.bf16.msk.msra.mxu1 %vm1608_vm7, %v1609_v63  ;;  %v4406_v22 = vmov %v4396_v27  ;;  %v1539_v48 = vpack.c.bf16 %v3346_v40, %v3375_v8  ;;  %v4446_v8 = vld [vmem:[#allocation9_spill] sm:$0xff] }
 0x24d   :  { %v720_v49 = vsel %vm4403_vm11, %v1910_v20, %v1985_v62  ;;  %vm1520_vm6 = vmpackc.low %vm2644_vm13, %vm2644_vm13  ;;  %1613 = vmatprep.subr.msk.bf16.mxu1 %vm1605_vm2, %v1612_v35  ;;  %v4415_v35 = vld [vmem:[#allocation41_spill] sm:$0xff]  ;;  %v2004_v58 = vpop.permute.xlu1 %2003 }
 0x24e   :  { %vm4407_vm8 = vmmov %vm4400_vm0  ;;  %v1521_v45 = vpack.c.bf16 %v721_v7, %v720_v49  ;;  %v1926_v32 = vunpack.i.h.bf16 %v4415_v35  ;;  %v1925_v50 = vunpack.i.l.bf16 %v4415_v35  ;;  %v1976_v7 = vunpack.i.h.bf16 %v3170_v36 }
 0x24f   :  { %v3404_v39 = vsel %vm4407_vm8, %v1876_v47, %v4406_v22  ;;  %vm4408_vm11 = vmmov %vm4402_vm10 }
 0x250   :  { %v713_v12 = vsel %vm4408_vm11, %v1916_v2, %v2001_v3  ;;  %vm4409_vm0 = vmpackc.low %vm4370_vm4, %vm4370_vm4  ;;  %v1542_v53 = vpack.c.bf16 %v3404_v39, %v3381_v18  ;;  %1616 = vmatpush1.bf16.msk.msra.mxu1 %vm1608_vm7, %v1615_v37  ;;  %v2006_v37 = vunpack.i.h.bf16 %v2004_v58  ;;  %v1995_v18 = vunpack.i.l.bf16 %v3299_v43 }
 0x251   :  { %1519 = vmatpush1.bf16.msk.msra.mxu0 %vm4409_vm0, %v1518_v1  ;;  %vm4410_vm8 = vmmov %vm4402_vm10  ;;  %v1618_v27 = vpack.c.bf16 %v713_v12, %v712_v19  ;;  %v1971_v19 = vunpack.i.h.bf16 %v3276_v29  ;;  %v1991_v39 = vunpack.i.h.bf16 %v3418_v15 }
 0x252   :  { %v724_v13 = vsel %vm4410_vm8, %v2000_v42, %v1910_v20  ;;  %vm4411_vm10 = vmmov %vm4410_vm8  ;;  %1522 = vmatprep.subr.msk.bf16.mxu0 %vm1520_vm6, %v1521_v45  ;;  %v1950_v42 = vunpack.i.l.bf16 %v3150_v21  ;;  %v1975_v45 = vunpack.i.l.bf16 %v3170_v36 }
 0x253   :  { %v725_v51 = vsel %vm4411_vm10, %v2001_v3, %v1911_v5  ;;  %vm1617_vm4 = vmpackc.low %vm2687_vm12, %vm2687_vm12  ;;  %v4416_v5 = vld [vmem:[#allocation42_spill] sm:$0xff]  ;;  %v2024_v3 = vpop.permute.xlu0 %2023 }
 0x254   :  { %vm4413_vm0 = vmmov %vm4410_vm8  ;;  %v1524_v56 = vpack.c.bf16 %v725_v51, %v724_v13  ;;  %v1921_v44 = vunpack.i.h.bf16 %v4416_v5  ;;  %v1920_v63 = vunpack.i.l.bf16 %v4416_v5  ;;  %1619 = vmatprep.subr.msk.bf16.mxu1 %vm1617_vm4, %v1618_v27  ;;  %v2026_v49 = vunpack.i.h.bf16 %v2024_v3  ;;  %v3515_v51 = vpop.permute.xlu1 %2008 }
 0x255   :  { %v716_v1 = vsel %vm4413_vm0, %v1985_v62, %v1915_v23  ;;  %vm4414_vm11 = vmmov %vm4413_vm0  ;;  %v2005_v23 = vunpack.i.l.bf16 %v2004_v58  ;;  %v2025_v22 = vunpack.i.l.bf16 %v2024_v3  ;;  %v4437_v58 = vld [vmem:[#allocation26_spill] sm:$0xff] }
 0x256   :  { %v717_v24 = vsel %vm4414_vm11, %v1986_v11, %v1916_v2  ;;  %vm1620_vm15 = vmpackc.low %vm2695_vm5, %vm2695_vm5  ;;  %v4418_v11 = vld [vmem:[#allocation43_spill] sm:$0xff]  ;;  %v1936_v2 = vunpack.i.h.bf16 %v4419_v55  ;;  %v649_v52 = vsel %vm4421_vm3, %v1921_v44, %v2006_v37  ;;  %vm4440_vm5 = vcmp.lt.s32.totalorder %v2261_v25, 112 }
 0x257   :  { %v1931_v62 = vunpack.i.h.bf16 %v4418_v11  ;;  %v1930_v26 = vunpack.i.l.bf16 %v4418_v11  ;;  %vm4420_vm2 = vmpackc.low %vm2676_vm14, %vm2676_vm14  ;;  %v1621_v46 = vpack.c.bf16 %v717_v24, %v716_v1 }
 0x258   :  { %1525 = vmatpush1.bf16.msk.msra.mxu0 %vm4420_vm2, %v1524_v56  ;;  %vm4422_vm7 = vmmov %vm4421_vm3 }
 0x259   :  { %1528 = vmatprep.subr.msk.bf16.mxu0 %vm1520_vm6, %v1527_v38  ;;  %v648_v57 = vsel %vm4422_vm7, %v1920_v63, %v2005_v23  ;;  %1622 = vmatpush1.bf16.msk.msra.mxu1 %vm1620_vm15, %v1621_v46  ;;  %vm1532_vm13 = vmpackc.low %vm2610_vm9, %vm2610_vm9  ;;  %v1970_v38 = vunpack.i.l.bf16 %v3276_v29  ;;  %vm4447_vm9 = vnez %v4446_v8 }
 0x25a   :  { %v1533_v9 = vpack.c.bf16 %v649_v52, %v648_v57  ;;  %vm4424_vm6 = vmmov %vm4421_vm3  ;;  %1625 = vmatprep.subr.msk.bf16.mxu1 %vm1617_vm4, %v1624_v30  ;;  %vm4436_vm4 = vnez %v4435_v33  ;;  %v4450_v57 = vld [vmem:[#allocation11_spill] sm:$0xff] }
 0x25b   :  { %v640_v12 = vsel %vm4424_vm6, %v1925_v50, %v2025_v22  ;;  %vm4425_vm8 = vmmov %vm4421_vm3 }
 0x25c   :  { %v641_v13 = vsel %vm4425_vm8, %v1926_v32, %v2026_v49  ;;  %vm4426_vm10 = vmmov %vm4420_vm2  ;;  %vm4438_vm8 = vnez %v4437_v58 }
 0x25d   :  { %1531 = vmatpush1.bf16.msk.msra.mxu0 %vm4426_vm10, %v1530_v4  ;;  %vm1535_vm0 = vmpackc.low %vm2666_vm1, %vm2666_vm1  ;;  %v2029_v4 = vpop.permute.xlu0 %2028  ;;  %1628 = vmatpush1.bf16.msk.msra.mxu1 %vm1620_vm15, %v1627_v6 }
 0x25e   :  { %vm4428_vm11 = vmmov %vm4421_vm3  ;;  %v2031_v5 = vunpack.i.h.bf16 %v2029_v4  ;;  %1534 = vmatprep.subr.msk.bf16.mxu0 %vm1532_vm13, %v1533_v9  ;;  %v2010_v9 = vunpack.i.l.bf16 %v3515_v51 }
 0x25f   :  { %v644_v1 = vsel %vm4428_vm11, %v2005_v23, %v1925_v50  ;;  %vm4429_vm2 = vmmov %vm4421_vm3  ;;  %v1630_v50 = vpack.c.bf16 %v641_v13, %v640_v12  ;;  %v1990_v12 = vunpack.i.l.bf16 %v3418_v15  ;;  %v4491_v15 = vld [vmem:[#allocation15_spill] sm:$0xff] }
 0x260   :  { %v645_v24 = vsel %vm4429_vm2, %v2006_v37, %v1926_v32  ;;  %vm4430_vm3 = vmmov %vm4429_vm2  ;;  %v2030_v32 = vunpack.i.l.bf16 %v2029_v4 }
 0x261   :  { %v652_v56 = vsel %vm4430_vm3, %v2025_v22, %v1920_v63  ;;  %vm4431_vm7 = vmmov %vm4429_vm2  ;;  %v3609_v34 = vpop.permute.xlu0 %2033  ;;  %v1996_v22 = vunpack.i.h.bf16 %v3299_v43 }
 0x262   :  { %v653_v16 = vsel %vm4431_vm7, %v2026_v49, %v1921_v44  ;;  %v4432_v44 = vld [vmem:[#allocation45_spill] sm:$0xff]  ;;  %vm4433_vm12 = vmmov %vm4429_vm2  ;;  %v1084_v10 = vsel %vm4440_vm5, %v2030_v32, %v1930_v26 }
 0x263   :  { %v1536_v35 = vpack.c.bf16 %v653_v16, %v652_v56  ;;  %v1956_v63 = vunpack.i.h.bf16 %v4432_v44  ;;  %v1955_v28 = vunpack.i.l.bf16 %v4432_v44  ;;  %v639_v17 = vsel %vm4433_vm12, %v1951_v0, %v1876_v47  ;;  %vm4434_vm14 = vmmov %vm4429_vm2 }
 0x264   :  { %v638_v30 = vsel %vm4434_vm14, %v1950_v42, %v1875_v60  ;;  %vm1629_vm6 = vmpackc.low %vm4436_vm4, %vm4436_vm4  ;;  %v3583_v60 = vpop.permute.xlu1 %2018  ;;  %v2015_v56 = vunpack.i.l.bf16 %v3434_v14  ;;  %vm4454_vm4 = vcmp.lt.s32.totalorder %v2261_v25, 113 }
 0x265   :  { %vm1632_vm10 = vmpackc.low %vm4438_vm8, %vm4438_vm8  ;;  %1537 = vmatpush1.bf16.msk.msra.mxu0 %vm1535_vm0, %v1536_v35  ;;  %1631 = vmatprep.subr.msk.bf16.mxu1 %vm1629_vm6, %v1630_v50  ;;  %v2021_v4 = vunpack.i.h.bf16 %v3583_v60 }
 0x266   :  { %vm4439_vm11 = vmmov %vm4429_vm2  ;;  %1540 = vmatprep.subr.msk.bf16.mxu0 %vm1532_vm13, %v1539_v48  ;;  %v2011_v48 = vunpack.i.h.bf16 %v3515_v51 }
 0x267   :  { %v643_v31 = vsel %vm4439_vm11, %v1871_v41, %v1951_v0  ;;  %vm4441_vm15 = vmmov %vm4440_vm5  ;;  %v642_v41 = vsel %vm4429_vm2, %v1870_v61, %v1950_v42  ;;  %v1633_v0 = vpack.c.bf16 %v645_v24, %v644_v1  ;;  %v1636_v61 = vpack.c.bf16 %v639_v17, %v638_v30  ;;  %v4459_v30 = vld [vmem:[#allocation8_spill] sm:$0xff] }
 0x268   :  { %v1085_v6 = vsel %vm4441_vm15, %v2031_v5, %v1931_v62  ;;  %vm4442_vm3 = vmmov %vm4440_vm5  ;;  %v1639_v42 = vpack.c.bf16 %v643_v31, %v642_v41  ;;  %v3652_v52 = vpop.permute.xlu1 %2038  ;;  %vm4451_vm15 = vnez %v4450_v57  ;;  %v2016_v24 = vunpack.i.h.bf16 %v3434_v14  ;;  %v4471_v41 = vld [vmem:[#allocation10_spill] sm:$0xff] }
 0x269   :  { %v3593_v47 = vsel %vm4442_vm3, %v1975_v45, %v1955_v28  ;;  %vm4443_vm7 = vmmov %vm4442_vm3  ;;  %v1545_v40 = vpack.c.bf16 %v1085_v6, %v1084_v10  ;;  %1634 = vmatpush1.bf16.msk.msra.mxu1 %vm1632_vm10, %v1633_v0  ;;  %1543 = vmatpush1.bf16.msk.msra.mxu0 %vm1535_vm0, %v1542_v53  ;;  %v2049_v53 = vpop.permute.xlu0 %2048  ;;  %v2020_v14 = vunpack.i.l.bf16 %v3583_v60  ;;  %v2035_v17 = vunpack.i.l.bf16 %v3609_v34  ;;  %v4465_v6 = vld [vmem:[#allocation13_spill] sm:$0xff] }
 0x26a   :  { %v3599_v20 = vsel %vm4443_vm7, %v1976_v7, %v1956_v63  ;;  %vm4444_vm12 = vmmov %vm4442_vm3  ;;  %1637 = vmatprep.subr.msk.bf16.mxu1 %vm1629_vm6, %v1636_v61  ;;  %v2051_v27 = vunpack.i.h.bf16 %v2049_v53  ;;  %v2050_v1 = vunpack.i.l.bf16 %v2049_v53  ;;  %vm4460_vm7 = vnez %v4459_v30 }
 0x26b   :  { %v1083_v46 = vsel %vm4444_vm12, %v1956_v63, %v1971_v19  ;;  %vm4445_vm14 = vmmov %vm4442_vm3  ;;  %v1554_v49 = vpack.c.bf16 %v3599_v20, %v3593_v47  ;;  %v2041_v20 = vunpack.i.h.bf16 %v3652_v52  ;;  %v2040_v0 = vunpack.i.l.bf16 %v3652_v52 }
 0x26c   :  { %v1082_v37 = vsel %vm4445_vm14, %v1955_v28, %v1970_v38  ;;  %vm1544_vm13 = vmpackc.low %vm4447_vm9, %vm4447_vm9  ;;  %v2044_v35 = vpop.permute.xlu1 %2043  ;;  %v2036_v28 = vunpack.i.h.bf16 %v3609_v34 }
 0x26d   :  { %vm4448_vm11 = vmmov %vm4442_vm3  ;;  %v1551_v21 = vpack.c.bf16 %v1083_v46, %v1082_v37  ;;  %1546 = vmatprep.subr.msk.bf16.mxu0 %vm1544_vm13, %v1545_v40  ;;  %1640 = vmatpush1.bf16.msk.msra.mxu1 %vm1632_vm10, %v1639_v42  ;;  %v2045_v44 = vunpack.i.l.bf16 %v2044_v35  ;;  %v3712_v63 = vpop.permute.xlu0 %2053 }
 0x26e   :  { %v1088_v23 = vsel %vm4448_vm11, %v1935_v54, %v2030_v32  ;;  %vm4449_vm5 = vmmov %vm4442_vm3  ;;  %v2046_v32 = vunpack.i.h.bf16 %v2044_v35 }
 0x26f   :  { %v1089_v3 = vsel %vm4449_vm5, %v1936_v2, %v2031_v5  ;;  %vm1547_vm2 = vmpackc.low %vm4451_vm15, %vm4451_vm15  ;;  %vm4466_vm5 = vnez %v4465_v6 }
 0x270   :  { %v1548_v13 = vpack.c.bf16 %v1089_v3, %v1088_v23  ;;  %vm4452_vm1 = vmmov %vm4442_vm3 }
 0x271   :  { %v1091_v51 = vsel %vm4452_vm1, %v2011_v48, %v1976_v7  ;;  %vm4453_vm0 = vmmov %vm4452_vm1  ;;  %v1012_v7 = vsel %vm4454_vm4, %v2050_v1, %v1990_v12  ;;  %v2069_v61 = vpop.permute.xlu0 %2068 }
 0x272   :  { %v3681_v16 = vsel %vm4453_vm0, %v1971_v19, %v2011_v48  ;;  %vm4455_vm6 = vmmov %vm4454_vm4  ;;  %1549 = vmatpush2.bf16.msk.msra.mxu0 %vm1547_vm2, %v1548_v13  ;;  %v2071_v40 = vunpack.i.h.bf16 %v2069_v61  ;;  %v2070_v8 = vunpack.i.l.bf16 %v2069_v61 }
 0x273   :  { %v1013_v19 = vsel %vm4455_vm6, %v2051_v27, %v1991_v39  ;;  %vm4456_vm8 = vmmov %vm4453_vm0  ;;  %1552 = vmatprep.subr.msk.bf16.mxu0 %vm1544_vm13, %v1551_v21  ;;  %v2056_v21 = vunpack.i.h.bf16 %v3712_v63 }
 0x274   :  { %v1090_v50 = vsel %vm4456_vm8, %v2010_v9, %v1975_v45  ;;  %v1557_v5 = vpack.c.bf16 %v1013_v19, %v1012_v7  ;;  %vm4457_vm10 = vmmov %vm4454_vm4  ;;  %v4482_v7 = vld [vmem:[#allocation16_spill] sm:$0xff] }
 0x275   :  { %v1016_v36 = vsel %vm4457_vm10, %v1995_v18, %v2050_v1  ;;  %vm4458_vm3 = vmmov %vm4454_vm4  ;;  %vm4472_vm10 = vnez %v4471_v41  ;;  %v1648_v29 = vpack.c.bf16 %v1091_v51, %v1090_v50 }
 0x276   :  { %v1017_v45 = vsel %vm4458_vm3, %v1996_v22, %v2051_v27  ;;  %vm1556_vm12 = vmpackc.low %vm4460_vm7, %vm4460_vm7  ;;  %1555 = vmatpush2.bf16.msk.msra.mxu0 %vm1547_vm2, %v1554_v49  ;;  %v2074_v27 = vpop.permute.xlu0 %2073 }
 0x277   :  { %vm4461_vm14 = vmmov %vm4453_vm0  ;;  %v1560_v34 = vpack.c.bf16 %v1017_v45, %v1016_v36  ;;  %1558 = vmatprep.subr.msk.bf16.mxu0 %vm1556_vm12, %v1557_v5 }
 0x278   :  { %v1093_v33 = vsel %vm4461_vm14, %v2046_v32, %v1936_v2  ;;  %vm4462_vm9 = vmmov %vm4453_vm0  ;;  %v4467_v2 = vld [vmem:[#allocation17_spill] sm:$0xff] }
 0x279   :  { %v1080_v58 = vsel %vm4462_vm9, %v1930_v26, %v2045_v44  ;;  %vm4463_vm13 = vmmov %vm4453_vm0 }
 0x27a   :  { %v1081_v31 = vsel %vm4463_vm13, %v1931_v62, %v2046_v32  ;;  %vm4464_vm11 = vmmov %vm4453_vm0  ;;  %vm4468_vm0 = vnez %v4467_v2  ;;  %v2084_v36 = vpop.permute.xlu0 %2083 }
 0x27b   :  { %v1092_v10 = vsel %vm4464_vm11, %v2045_v44, %v1935_v54  ;;  %vm1641_vm1 = vmpackc.low %vm4466_vm5, %vm4466_vm5  ;;  %v1645_v55 = vpack.c.bf16 %v1081_v31, %v1080_v58  ;;  %v2059_v54 = vpop.permute.xlu1 %2058  ;;  %v2076_v44 = vunpack.i.h.bf16 %v2074_v27  ;;  %v2085_v58 = vunpack.i.l.bf16 %v2084_v36 }
 0x27c   :  { %vm1644_vm4 = vmpackc.low %vm4468_vm0, %vm4468_vm0  ;;  %v1642_v26 = vpack.c.bf16 %v1093_v33, %v1092_v10  ;;  %v2061_v46 = vunpack.i.h.bf16 %v2059_v54  ;;  %v2060_v37 = vunpack.i.l.bf16 %v2059_v54  ;;  %v2086_v33 = vunpack.i.h.bf16 %v2084_v36 }
 0x27d   :  { %vm4469_vm6 = vmmov %vm4458_vm3 }
 0x27e   :  { %v1011_v11 = vsel %vm4469_vm6, %v2016_v24, %v2021_v4  ;;  %vm4470_vm8 = vmmov %vm4458_vm3  ;;  %1643 = vmatprep.subr.msk.bf16.mxu1 %vm1641_vm1, %v1642_v26  ;;  %v2094_v54 = vpop.permute.xlu0 %2093 }
 0x27f   :  { %v1010_v62 = vsel %vm4470_vm8, %v2015_v56, %v2020_v14  ;;  %vm1559_vm3 = vmpackc.low %vm4472_vm10, %vm4472_vm10  ;;  %1646 = vmatpush2.bf16.msk.msra.mxu1 %vm1644_vm4, %v1645_v55  ;;  %v2064_v57 = vpop.permute.xlu1 %2063 }
 0x280   :  { %vm4473_vm14 = vmmov %vm4462_vm9  ;;  %vm4476_vm9 = vcmp.lt.s32.totalorder %v2261_v25, 127  ;;  %1561 = vmatpush2.bf16.msk.msra.mxu0 %vm1559_vm3, %v1560_v34  ;;  %v2066_v13 = vunpack.i.h.bf16 %v2064_v57  ;;  %1649 = vmatprep.subr.msk.bf16.mxu1 %vm1641_vm1, %v1648_v29  ;;  %v2065_v51 = vunpack.i.l.bf16 %v2064_v57  ;;  %v2095_v34 = vunpack.i.l.bf16 %v2094_v54 }
 0x281   :  { %v1078_v47 = vsel %vm4473_vm14, %v1970_v38, %v2010_v9  ;;  %v1563_v38 = vpack.c.bf16 %v1011_v11, %v1010_v62  ;;  %vm4474_vm15 = vmmov %vm4469_vm6  ;;  %v940_v42 = vsel %vm4476_vm9, %v2070_v8, %v2040_v0  ;;  %v2055_v9 = vunpack.i.l.bf16 %v3712_v63 }
 0x282   :  { %v1014_v48 = vsel %vm4474_vm15, %v2035_v17, %v2015_v56  ;;  %vm4475_vm2 = vmmov %vm4469_vm6  ;;  %v1651_v3 = vpack.c.bf16 %v3681_v16, %v1078_v47  ;;  %v4480_v16 = vld [vmem:[#allocation14_spill] sm:$0xff]  ;;  %v2075_v63 = vunpack.i.l.bf16 %v2074_v27  ;;  %v2096_v47 = vunpack.i.h.bf16 %v2094_v54 }
 0x283   :  { %v1015_v23 = vsel %vm4475_vm2, %v2036_v28, %v2016_v24  ;;  %vm4477_vm13 = vmmov %vm4476_vm9  ;;  %1564 = vmatprep.subr.msk.bf16.mxu0 %vm1556_vm12, %v1563_v38  ;;  %vm4481_vm8 = vnez %v4480_v16  ;;  %vm4483_vm12 = vnez %v4482_v7  ;;  %v1009_v5 = vsel %vm4475_vm2, %v1991_v39, %v2066_v13  ;;  %v2079_v39 = vpop.permute.xlu1 %2078  ;;  %v4516_v16 = vld [vmem:[#allocation29_spill] sm:$0xff]  ;;  %v4517_v7 = vld [vmem:[#allocation30_spill] sm:$0xff] }
 0x284   :  { %v941_v49 = vsel %vm4477_vm13, %v2071_v40, %v2041_v20  ;;  %v1566_v1 = vpack.c.bf16 %v1015_v23, %v1014_v48  ;;  %vm4478_vm11 = vmmov %vm4475_vm2  ;;  %1652 = vmatpush2.bf16.msk.msra.mxu1 %vm1644_vm4, %v1651_v3  ;;  %v4506_v23 = vld [vmem:[#allocation28_spill] sm:$0xff]  ;;  %v2104_v3 = vpop.permute.xlu0 %2103 }
 0x285   :  { %v1569_v53 = vpack.c.bf16 %v941_v49, %v940_v42  ;;  %v1019_v24 = vsel %vm4478_vm11, %v2061_v46, %v2036_v28  ;;  %vm4479_vm6 = vmmov %vm4475_vm2  ;;  %v4489_v28 = vld [vmem:[#allocation12_spill] sm:$0xff]  ;;  %vm4492_vm11 = vnez %v4491_v15  ;;  %v4507_v42 = vld [vmem:[#allocation19_spill] sm:$0xff] }
 0x286   :  { %v1018_v56 = vsel %vm4479_vm6, %v2060_v37, %v2035_v17  ;;  %vm1568_vm7 = vmpackc.low %vm4481_vm8, %vm4481_vm8  ;;  %1567 = vmatpush2.bf16.msk.msra.mxu0 %vm1559_vm3, %v1566_v1  ;;  %vm4490_vm0 = vnez %v4489_v28  ;;  %v2080_v17 = vunpack.i.l.bf16 %v2079_v39 }
 0x287   :  { %vm1656_vm14 = vmpackc.low %vm4483_vm12, %vm4483_vm12  ;;  %1570 = vmatprep.subr.msk.bf16.mxu0 %vm1568_vm7, %v1569_v53  ;;  %v1660_v10 = vpack.c.bf16 %v1019_v24, %v1018_v56  ;;  %v2089_v11 = vpop.permute.xlu1 %2088  ;;  %v4511_v53 = vld [vmem:[#allocation38_spill] sm:$0xff]  ;;  %v2106_v56 = vunpack.i.h.bf16 %v2104_v3 }
 0x288   :  { %vm4484_vm5 = vmmov %vm4476_vm9  ;;  %v2091_v26 = vunpack.i.h.bf16 %v2089_v11  ;;  %v2090_v55 = vunpack.i.l.bf16 %v2089_v11  ;;  %v4514_v1 = vunpack.i.h.bf16 %v4511_v53  ;;  %v4542_v11 = vld [vmem:[#allocation34_spill] sm:$0xff] }
 0x289   :  { %v944_v19 = vsel %vm4484_vm5, %v2055_v9, %v2070_v8  ;;  %vm4485_vm1 = vmmov %vm4484_vm5  ;;  %v4502_v8 = vld [vmem:[#allocation18_spill] sm:$0xff] }
 0x28a   :  { %v945_v35 = vsel %vm4485_vm1, %v2056_v21, %v2071_v40  ;;  %vm4486_vm15 = vmmov %vm4475_vm2  ;;  %v938_v2 = vsel %vm4485_vm1, %v2075_v63, %v2080_v17 }
 0x28b   :  { %v1021_v50 = vsel %vm4486_vm15, %v2066_v13, %v1996_v22  ;;  %vm4487_vm9 = vmmov %vm4475_vm2  ;;  %v1572_v30 = vpack.c.bf16 %v945_v35, %v944_v19  ;;  %v4512_v13 = vunpack.i.l.bf16 %v4511_v53  ;;  %v4518_v19 = vld [vmem:[#allocation6_spill] sm:$0xff] }
 0x28c   :  { %v1008_v32 = vsel %vm4487_vm9, %v1990_v12, %v2065_v51  ;;  %vm4488_vm13 = vmmov %vm4475_vm2 }
 0x28d   :  { %v1020_v22 = vsel %vm4488_vm13, %v2065_v51, %v1995_v18  ;;  %vm1653_vm4 = vmpackc.low %vm4490_vm0, %vm4490_vm0  ;;  %v1657_v12 = vpack.c.bf16 %v1009_v5, %v1008_v32  ;;  %v2081_v18 = vunpack.i.h.bf16 %v2079_v39  ;;  %v2105_v51 = vunpack.i.l.bf16 %v2104_v3  ;;  %v4525_v39 = vld [vmem:[#allocation36_spill] sm:$0xff] }
 0x28e   :  { %vm1571_vm6 = vmpackc.low %vm4492_vm11, %vm4492_vm11  ;;  %v1654_v43 = vpack.c.bf16 %v1021_v50, %v1020_v22  ;;  %vm4508_vm11 = vnez %v4507_v42  ;;  %v4520_v50 = vld [vmem:[#allocation39_spill] sm:$0xff]  ;;  %v4526_v28 = vunpack.i.l.bf16 %v4525_v39 }
 0x28f   :  { %vm4493_vm10 = vmmov %vm4475_vm2  ;;  %1573 = vmatpush2.bf16.msk.msra.mxu0 %vm1571_vm6, %v1572_v30  ;;  %v4521_v5 = vunpack.i.h.bf16 %v4520_v50  ;;  %v4523_v22 = vunpack.i.l.bf16 %v4520_v50  ;;  %v4534_v30 = vld [vmem:[#allocation37_spill] sm:$0xff] }
 0x290   :  { %v1006_v45 = vsel %vm4493_vm10, %v2020_v14, %v2060_v37  ;;  %vm4494_vm3 = vmmov %vm4475_vm2  ;;  %1655 = vmatprep.subr.msk.bf16.mxu1 %vm1653_vm4, %v1654_v43  ;;  %vm4503_vm10 = vnez %v4502_v8  ;;  %v4528_v43 = vunpack.i.h.bf16 %v4525_v39 }
 0x291   :  { %v1007_v31 = vsel %vm4494_vm3, %v2021_v4, %v2061_v46  ;;  %vm4495_vm5 = vmmov %vm4485_vm1  ;;  %1658 = vmatpush2.bf16.msk.msra.mxu1 %vm1656_vm14, %v1657_v12 }
 0x292   :  { %v939_v6 = vsel %vm4495_vm5, %v2076_v44, %v2081_v18  ;;  %vm4496_vm15 = vmmov %vm4485_vm1  ;;  %1661 = vmatprep.subr.msk.bf16.mxu1 %vm1653_vm4, %v1660_v10  ;;  %v1663_v41 = vpack.c.bf16 %v1007_v31, %v1006_v45  ;;  %v4533_v45 = vld [vmem:[#allocation32_spill] sm:$0xff]  ;;  %v4537_v31 = vunpack.i.l.bf16 %v4534_v30 }
 0x293   :  { %v1575_v14 = vpack.c.bf16 %v939_v6, %v938_v2  ;;  %v942_v60 = vsel %vm4496_vm15, %v2085_v58, %v2075_v63  ;;  %vm4497_vm2 = vmmov %vm4485_vm1  ;;  %vm4519_vm15 = vnez %v4518_v19  ;;  %v4539_v2 = vld [vmem:[#allocation40_spill] sm:$0xff] }
 0x294   :  { %v943_v4 = vsel %vm4497_vm2, %v2086_v33, %v2076_v44  ;;  %vm4498_vm9 = vmmov %vm4485_vm1 }
 0x295   :  { %v1578_v62 = vpack.c.bf16 %v943_v4, %v942_v60  ;;  %1576 = vmatprep.subr.msk.bf16.mxu0 %vm1568_vm7, %v1575_v14  ;;  %v949_v61 = vsel %vm4498_vm9, %v2091_v26, %v2056_v21  ;;  %vm4499_vm13 = vmmov %vm4485_vm1  ;;  %1664 = vmatpush2.bf16.msk.msra.mxu1 %vm1656_vm14, %v1663_v41  ;;  %vm4513_vm14 = vcmp.lt.s32.totalorder %v2261_v25, 111  ;;  %v4540_v14 = vmov 0   ;;  %v4541_v60 = vld [vmem:[#allocation33_spill] sm:$0xff]  ;;  %v4543_v25 = vld [vmem:[#allocation35_spill] sm:$0xff] }
 0x296   :  { %v936_v46 = vsel %vm4499_vm13, %v2040_v0, %v2090_v55  ;;  %vm4500_vm0 = vmmov %vm4485_vm1  ;;  %v2099_v0 = vpop.permute.xlu1 %2098 }
 0x297   :  { %v937_v37 = vsel %vm4500_vm0, %v2041_v20, %v2091_v26  ;;  %vm4501_vm4 = vmmov %vm4500_vm0  ;;  %1579 = vmatpush2.bf16.msk.msra.mxu0 %vm1571_vm6, %v1578_v62  ;;  %v2101_v48 = vunpack.i.h.bf16 %v2099_v0  ;;  %v2100_v57 = vunpack.i.l.bf16 %v2099_v0 }
 0x298   :  { %v948_v40 = vsel %vm4501_vm4, %v2090_v55, %v2055_v9  ;;  %vm1665_vm8 = vmpackc.low %vm4503_vm10, %vm4503_vm10  ;;  %v1669_v38 = vpack.c.bf16 %v937_v37, %v936_v46  ;;  %1255 = vmatprep.subr.bf16.mxu0 %v4506_v23  ;;  %v2131_v23 = vmov 1983009808  }
 0x299   :  { %v1666_v29 = vpack.c.bf16 %v949_v61, %v948_v40  ;;  %vm4504_vm7 = vmmov %vm4500_vm0  ;;  %v1164_v27 = vsel %vm4513_vm14, %v2100_v57, %v4512_v13  ;;  %v1195_v40 = vpop.permute.xlu0 %1194  ;;  %v1398_v3 = vunpack.c.l.s4 %v2131_v23 }
 0x29a   :  { %v946_v52 = vsel %vm4504_vm7, %v2095_v34, %v2085_v58  ;;  %vm4505_vm3 = vmmov %vm4500_vm0 }
 0x29b   :  { %v947_v20 = vsel %vm4505_vm3, %v2096_v47, %v2086_v33  ;;  %vm1668_vm6 = vmpackc.low %vm4508_vm11, %vm4508_vm11  ;;  %1667 = vmatprep.subr.msk.bf16.mxu1 %vm1665_vm8, %v1666_v29  ;;  %1256 = vmatpush2.bf16.msra.mxu0 %v4516_v16  ;;  %v4535_v33 = vunpack.i.h.bf16 %v4534_v30  ;;  %vm4544_vm11 = vcmask 261120  }
 0x29c   :  { %v1672_v49 = vpack.c.bf16 %v947_v20, %v946_v52  ;;  %vm4509_vm5 = vmmov %vm4500_vm0  ;;  %1670 = vmatpush2.bf16.msk.msra.mxu1 %vm1668_vm6, %v1669_v38  ;;  %1257 = vmatprep.subr.bf16.mxu0 %v4517_v7 }
 0x29d   :  { %v934_v21 = vsel %vm4509_vm5, %v2080_v17, %v2095_v34  ;;  %vm4510_vm12 = vmmov %vm4500_vm0  ;;  %v4531_v17 = vld [vmem:[#allocation7_spill] sm:$0xff] }
 0x29e   :  { %v935_v9 = vsel %vm4510_vm12, %v2081_v18, %v2096_v47  ;;  %vm4515_vm1 = vmmov %vm4513_vm14  ;;  %1673 = vmatprep.subr.msk.bf16.mxu1 %vm1665_vm8, %v1672_v49  ;;  %v4530_v18 = vld [vmem:[#allocation31_spill] sm:$0xff]  ;;  %vm4532_vm10 = vnez %v4531_v17 }
 0x29f   :  { %v1165_v24 = vsel %vm4515_vm1, %v2101_v48, %v4514_v1  ;;  %vm1677_vm2 = vmpackc.low %vm4519_vm15, %vm4519_vm15  ;;  %v1675_v35 = vpack.c.bf16 %v935_v9, %v934_v21  ;;  %1258 = vmatpush2.bf16.msra.mxu0 %v4530_v18  ;;  %v1399_v9 = vunpack.c.0.s8 %v1398_v3 }
 0x2a0   :  { %vm4522_vm9 = vmmov %vm4515_vm1  ;;  %v1678_v63 = vpack.c.bf16 %v1165_v24, %v1164_v27 }
 0x2a1   :  { %v1153_v32 = vsel %vm4522_vm9, %v4521_v5, %v2101_v48  ;;  %vm4524_vm13 = vmmov %vm4515_vm1  ;;  %1676 = vmatpush2.bf16.msk.msra.mxu1 %vm1668_vm6, %v1675_v35 }
 0x2a2   :  { %v1152_v44 = vsel %vm4524_vm13, %v4523_v22, %v2100_v57  ;;  %vm4527_vm0 = vmmov %vm4515_vm1  ;;  %1679 = vmatprep.subr.msk.bf16.mxu0 %vm1677_vm2, %v1678_v63  ;;  %1337 = vmatprep.subr.bf16.mxu1 %v4533_v45 }
 0x2a3   :  { %v1162_v15 = vsel %vm4527_vm0, %v2105_v51, %v4526_v28  ;;  %vm4529_vm4 = vmmov %vm4527_vm0  ;;  %v1681_v36 = vpack.c.bf16 %v1153_v32, %v1152_v44  ;;  %1260 = vmatmul.mubr.bf16.vlgmr.msra.gmra.mxu0 %v4539_v2  ;;  %v62_v62 = vpop.xlane.xlu1 %61 }
 0x2a4   :  { %v1163_v12 = vsel %vm4529_vm4, %v2106_v56, %v4528_v43  ;;  %vm1680_vm8 = vmpackc.low %vm4532_vm10, %vm4532_vm10  ;;  %1382 = vmatprep.mubr.bf16.mxu0 %v4540_v14  ;;  %v63_v26 = vrot.slane %v62_v62, 4 }
 0x2a5   :  { %vm4536_vm7 = vmmov %vm4527_vm0  ;;  %v1684_v6 = vpack.c.bf16 %v1163_v12, %v1162_v15  ;;  %1682 = vmatpush1.bf16.msk.msra.mxu0 %vm1680_vm8, %v1681_v36  ;;  %1338 = vmatpush2.bf16.msra.mxu1 %v4541_v60 }
 0x2a6   :  { %v1151_v58 = vsel %vm4536_vm7, %v4535_v33, %v2106_v56  ;;  %vm4538_vm3 = vmmov %vm4527_vm0  ;;  %1339 = vmatprep.subr.bf16.mxu1 %v4542_v11  ;;  %v64_v55 = vadd.f32 %v63_v26, %v62_v62 }
 0x2a7   :  { %v1150_v10 = vsel %vm4538_vm3, %v4537_v31, %v2105_v51  ;;  %1685 = vmatprep.subr.msk.bf16.mxu0 %vm1677_vm2, %v1684_v6  ;;  %v4545_v51 = vld [vmem:[#allocation5_spill] sm:$0xff] }
 0x2a8   :  { %v1687_v4 = vpack.c.bf16 %v1151_v58, %v1150_v10  ;;  %v65_v54 = vrot.slane %v64_v55, 2  ;;  %v1402_v16 = vsub.s32 %v1399_v9, %v4545_v51 }
 0x2a9   :  { %1340 = vmatpush2.bf16.msra.mxu1 %v4543_v25 }
 0x2aa   :  { %1688 = vmatpush1.bf16.msk.msra.mxu0 %vm1680_vm8, %v1687_v4  ;;  %v66_v41 = vadd.f32 %v65_v54, %v64_v55 }
 0x2ac   :  { %1342 = vmatmul.mubr.bf16.vlgmr.msra.gmra.mxu1 %v4539_v2  ;;  %v67_v47 = vrot.slane %v66_v41, 1 }
 0x2ad   :  { %1689 = vmatmul.mubr.msk.bf16.vlgmr.msra.gmra.mxu0 %vm4544_vm11, %v2942_v59 }
 0x2ae   :  { %v68_v34 = vadd.f32 %v67_v47, %v66_v41 }
 0x2b0   :  { %1690 = vpush %v68_v34 }
 0x2e1   :  { %s1691_s0 = spop %1690 }
 0x2e2   :  { %s70_s5 = smul.f32 0.001953125, %s1691_s0 }
 0x2e4   :  { %72 = sst [smem:[#allocation2]] %s70_s5 }
 0x2e5   :  { %1423 = dma.smem_to_hbm %s2130_s10, 16, %s4039_s7, [#allocation3]  }
 0x2fd   :  { %v1302_v61 = vpop.f32.mrf.mxu1 }
 0x2ff   :  { %v1304_v59 = vpop.f32.mrf.mxu1 }
 0x301   :  { %v1306_v46 = vpop.f32.mrf.mxu1 }
 0x303   :  { %v1307_v37 = vpop.f32.mrf.mxu1 }
 0x363   :  { %v1261_v8 = vpop.f32.mrf.mxu0 }
 0x364   :  { %v1262_v29 = vadd.f32 %v1261_v8, %v1195_v40 }
 0x365   :  { %v1263_v0 = vpop.f32.mrf.mxu0 }
 0x366   :  { %v1264_v38 = vadd.f32 %v1263_v0, %v1195_v40  ;;  %v1303_v20 = vadd.f32 %v1302_v61, %v1262_v29 }
 0x367   :  { %v1265_v52 = vpop.f32.mrf.mxu0 }
 0x368   :  { %v1305_v48 = vadd.f32 %v1304_v59, %v1264_v38 }
 0x369   :  { %v1266_v42 = vpop.f32.mrf.mxu0 }
 0x36a   :  { %v1395_v49 = vcombine.low %v1303_v20, %v1305_v48 }
 0x36c   :  { %v1343_v21 = vpop.f32.mrf.mxu1  ;;  %v1403_v32 = vrot.slane %v1395_v49, %v1402_v16 }
 0x36d   :  { %v1384_v57 = vpop.f32.mrf.mxu0  ;;  %v1344_v53 = vadd.f32 %v1343_v21, %v1195_v40 }
 0x36e   :  { %v1345_v27 = vpop.f32.mrf.mxu1 }
 0x36f   :  { %v1386_v13 = vpop.f32.mrf.mxu0  ;;  %v1346_v1 = vadd.f32 %v1345_v27, %v1195_v40  ;;  %v1385_v7 = vadd.f32 %v1384_v57, %v1344_v53 }
 0x370   :  { %v1347_v56 = vpop.f32.mrf.mxu1 }
 0x371   :  { %v1388_v24 = vpop.f32.mrf.mxu0  ;;  %v1387_v19 = vadd.f32 %v1386_v13, %v1346_v1 }
 0x372   :  { %v1348_v50 = vpop.f32.mrf.mxu1 }
 0x373   :  { %v1389_v35 = vpop.f32.mrf.mxu0  ;;  %v1396_v5 = vcombine.low %v1385_v7, %v1387_v19 }
 0x375   :  { %v1410_v22 = vrot.slane %v1396_v5, %v1402_v16 }
 0x377   :  { %v1411_v44 = vcombine.low %v1403_v32, %v1410_v22 }
 0x379   :  { %1413 = vst [vmem:[%s4038_s6] sm:$0xff] %v1411_v44 }
 0x37a   :  { %2117 = dma.done.wait [#allocation3], 16  }
 0x37b   :  { %2118 = vsyncadd [#allocation3], 4294967280 }
 0x37c   :  { %1429 = sfence }
 0x37d   :  { %1430 = vsyncpa [#allocation3], 1 }

</bundles_post_ra>
